<compile_context>
chip_gen: v7x
topology: tpu7x:2x2x1
jax: 0.10.0
libtpu: 0.0.40
codegen_flags: <defaults>
</compile_context>

<pallas_src>
import functools

import jax
import jax.numpy as jnp
from jax import lax
from jax.experimental import pallas as pl
from jax.experimental.pallas import tpu as pltpu

NEURON_CDECAY = 1.0 / 2.0
NEURON_VDECAY = 3.0 / 4.0
NEURON_VTH = 0.5

_MAX_STATIC_UNROLL_T = 16


def _sddpg_actor_kernel(
    x_ref,                      # (T, Bb, S)  input spike trains, all steps
    w1_ref, b1_ref,             # (S,  H1), (1, H1)
    w2_ref, b2_ref,             # (H1, H2), (1, H2)
    w3_ref, b3_ref,             # (H2, H3), (1, H3)
    w4_ref, b4_ref,             # (H3, A),  (1, A)
    out_ref,                    # (Bb, A)
    *, T,
):
    Bb = out_ref.shape[0]
    H1, H2, H3, A = (w1_ref.shape[1], w2_ref.shape[1],
                     w3_ref.shape[1], w4_ref.shape[1])

    # Load weights once; hoist bias broadcasts out of the time loop.
    w1, w2, w3, w4 = w1_ref[...], w2_ref[...], w3_ref[...], w4_ref[...]
    b1 = jnp.broadcast_to(b1_ref[...], (Bb, H1))
    b2 = jnp.broadcast_to(b2_ref[...], (Bb, H2))
    b3 = jnp.broadcast_to(b3_ref[...], (Bb, H3))
    b4 = jnp.broadcast_to(b4_ref[...], (Bb, A))

    def neuron(pre, w, b, u, v, s):
        syn = jnp.dot(pre, w, preferred_element_type=jnp.float32) + b
        cur = u * NEURON_CDECAY + syn
        # s is exactly 0/1 -> equivalent to v * VDECAY * (1 - s), one op shorter.
        volt = jnp.where(s > 0.0, 0.0, v * NEURON_VDECAY) + cur
        spk = (volt > NEURON_VTH).astype(jnp.float32)
        return cur, volt, spk

    z = lambda n: jnp.zeros((Bb, n), jnp.float32)
    carry = (z(H1), z(H1), z(H1),
             z(H2), z(H2), z(H2),
             z(H3), z(H3), z(H3),
             z(A), z(A), z(A), z(A))

    def step(t, carry):
        (u1, v1, s1, u2, v2, s2, u3, v3, s3, u4, v4, s4, acc) = carry
        x_t = x_ref[t]                                     # (Bb, S)
        u1, v1, s1 = neuron(x_t, w1, b1, u1, v1, s1)
        u2, v2, s2 = neuron(s1, w2, b2, u2, v2, s2)
        u3, v3, s3 = neuron(s2, w3, b3, u3, v3, s3)
        u4, v4, s4 = neuron(s3, w4, b4, u4, v4, s4)
        return (u1, v1, s1, u2, v2, s2, u3, v3, s3, u4, v4, s4, acc + s4)

    if T <= _MAX_STATIC_UNROLL_T:
        for t in range(T):                                 # static unroll
            carry = step(t, carry)
    else:
        # Bounded live ranges for long spike windows (module default T=50).
        carry = lax.fori_loop(0, T, step, carry, unroll=2)

    out_ref[...] = carry[-1] / jnp.float32(T)


def actor_net_spiking_forward(x_bst, params, *, batch_block=None):
    """Forward pass.  x_bst: (B, S, T) float32 spike trains (PyTorch layout).

    params: w{1..4} of shape [in, out] (pre-transposed vs. torch.nn.Linear,
    done once at init) and b{1..4} of shape [1, out].
    Returns (B, action_num) = mean output-layer spike count over the window.
    """
    B, S, T = x_bst.shape
    w1, b1 = params["w1"], params["b1"]
    w2, b2 = params["w2"], params["b2"]
    w3, b3 = params["w3"], params["b3"]
    w4, b4 = params["w4"], params["b4"]
    A = w4.shape[1]

    x_tbs = jnp.transpose(x_bst, (2, 0, 1))                # (T, B, S)
    kernel = functools.partial(_sddpg_actor_kernel, T=T)
    out_shape = jax.ShapeDtypeStruct((B, A), jnp.float32)
    args = (x_tbs, w1, b1, w2, b2, w3, b3, w4, b4)

    use_batch_grid = (
        batch_block is not None
        and batch_block % 8 == 0
        and B % batch_block == 0
        and B // batch_block >= 2
    )

    if not use_batch_grid:
        # Grid-less call: all operands fully resident in VMEM, no pipeline
        # prologue/epilogue, no double-buffering of the 9 weight/bias inputs.
        return pl.pallas_call(kernel, out_shape=out_shape)(*args)

    # Batch-tiled path: 1-D "parallel" grid over batch blocks (megacore / v7x).
    # Weights/biases keep constant index maps so they stay resident.
    nb = B // batch_block

    def const_spec(shape):
        return pl.BlockSpec(shape, lambda i: (0,) * len(shape))

    in_specs = [
        pl.BlockSpec((T, batch_block, S), lambda i: (0, i, 0)),
        const_spec(w1.shape), const_spec(b1.shape),
        const_spec(w2.shape), const_spec(b2.shape),
        const_spec(w3.shape), const_spec(b3.shape),
        const_spec(w4.shape), const_spec(b4.shape),
    ]
    out_specs = pl.BlockSpec((batch_block, A), lambda i: (i, 0))

    return pl.pallas_call(
        kernel,
        out_shape=out_shape,
        grid=(nb,),
        in_specs=in_specs,
        out_specs=out_specs,
        compiler_params=pltpu.CompilerParams(
            dimension_semantics=("parallel",)),
    )(*args)


# Whole wrapper (transpose + pallas_call) under one jit so nothing runs as a
# standalone per-call XLA op.
actor_net_spiking_forward_jit = jax.jit(
    actor_net_spiking_forward, static_argnames=("batch_block",))


def actor_net_spiking_reference(x_bst, params):
    """Pure-JAX reference mirroring the PyTorch forward exactly."""
    B, S, T = x_bst.shape
    w1, b1 = params["w1"], params["b1"]
    w2, b2 = params["w2"], params["b2"]
    w3, b3 = params["w3"], params["b3"]
    w4, b4 = params["w4"], params["b4"]
    H1, H2, H3, A = w1.shape[1], w2.shape[1], w3.shape[1], w4.shape[1]

    zeros = lambda n: jnp.zeros((B, n), jnp.float32)
    state = (zeros(H1), zeros(H1), zeros(H1),
             zeros(H2), zeros(H2), zeros(H2),
             zeros(H3), zeros(H3), zeros(H3),
             zeros(A), zeros(A), zeros(A), zeros(A))

    def neuron(pre, w, b, u, v, s):
        syn = jnp.dot(pre, w, precision=lax.Precision.HIGHEST) + b
        cur = u * NEURON_CDECAY + syn
        volt = v * NEURON_VDECAY * (1.0 - s) + cur
        spk = (volt > NEURON_VTH).astype(jnp.float32)
        return cur, volt, spk

    def step(carry, x_t):
        (u1, v1, s1, u2, v2, s2, u3, v3, s3, u4, v4, s4, acc) = carry
        u1, v1, s1 = neuron(x_t, w1, b1, u1, v1, s1)
        u2, v2, s2 = neuron(s1, w2, b2, u2, v2, s2)
        u3, v3, s3 = neuron(s2, w3, b3, u3, v3, s3)
        u4, v4, s4 = neuron(s3, w4, b4, u4, v4, s4)
        return (u1, v1, s1, u2, v2, s2, u3, v3, s3, u4, v4, s4, acc + s4), None

    final, _ = lax.scan(step, state, jnp.transpose(x_bst, (2, 0, 1)))
    return final[-1] / T


def init_params(key, state_num, action_num, hidden1, hidden2, hidden3):
    """Deterministic synthetic init (torch.nn.Linear-like uniform ranges).

    Weights are created directly in [in, out] layout and biases as (1, out):
    the one-time layout prep lives here, NOT in the per-call forward path.
    """
    dims = [(state_num, hidden1), (hidden1, hidden2),
            (hidden2, hidden3), (hidden3, action_num)]
    params = {}
    for i, (fan_in, fan_out) in enumerate(dims, start=1):
        key, kw, kb = jax.random.split(key, 3)
        bound = 1.0 / jnp.sqrt(jnp.float32(fan_in))
        params[f"w{i}"] = jax.random.uniform(
            kw, (fan_in, fan_out), jnp.float32, -bound, bound)
        params[f"b{i}"] = jax.random.uniform(
            kb, (1, fan_out), jnp.float32, -bound, bound)
    return params


if __name__ == "__main__":
    state_num, action_num = 8, 4
    hidden1 = hidden2 = hidden3 = 32

    key = jax.random.PRNGKey(0)
    key, kp = jax.random.split(key)
    params = init_params(kp, state_num, action_num, hidden1, hidden2, hidden3)

    # (batch, batch_window, batch_block):
    #   1) small window -> static unroll, grid-less call
    #   2) module-default window (50) -> in-kernel fori_loop path
    #   3) larger batch -> batch-tiled "parallel" grid path
    configs = [
        (4, 8, None),
        (4, 50, None),
        (32, 8, 16),
    ]

    for cfg_idx, (batch, batch_window, batch_block) in enumerate(configs):
        key, kx = jax.random.split(key)
        # Synthetic Poisson-like spike-train input (exact 0/1 spikes).
        x = (jax.random.uniform(kx, (batch, state_num, batch_window)) > 0.5
             ).astype(jnp.float32)

        out = jax.block_until_ready(
            actor_net_spiking_forward_jit(x, params, batch_block=batch_block))
        ref = jax.block_until_ready(actor_net_spiking_reference(x, params))

        assert out.shape == (batch, action_num), (cfg_idx, out.shape)
        assert jnp.allclose(out, ref, atol=1e-5), (cfg_idx, out, ref)

    print("KERNEL_OK")
</pallas_src>

<mosaic_0001>
module attributes {stable_mosaic.version = 11 : i64} {
  func.func @_sddpg_actor_kernel(%arg0: memref<8x4x8xf32, #tpu.memory_space<vmem>>, %arg1: memref<8x32xf32, #tpu.memory_space<vmem>>, %arg2: memref<1x32xf32, #tpu.memory_space<vmem>>, %arg3: memref<32x32xf32, #tpu.memory_space<vmem>>, %arg4: memref<1x32xf32, #tpu.memory_space<vmem>>, %arg5: memref<32x32xf32, #tpu.memory_space<vmem>>, %arg6: memref<1x32xf32, #tpu.memory_space<vmem>>, %arg7: memref<32x4xf32, #tpu.memory_space<vmem>>, %arg8: memref<1x4xf32, #tpu.memory_space<vmem>>, %arg9: memref<4x4xf32, #tpu.memory_space<vmem>>) attributes {dimension_semantics = [], scalar_prefetch = 0 : i64, scratch_operands = 0 : i64, tpu.core_type = #tpu.core_type<tc>} {
    %c0 = arith.constant 0 : index
    %c0_0 = arith.constant 0 : index
    %0 = vector.load %arg1[%c0, %c0_0] : memref<8x32xf32, #tpu.memory_space<vmem>>, vector<8x32xf32>
    %c0_1 = arith.constant 0 : index
    %c0_2 = arith.constant 0 : index
    %1 = vector.load %arg3[%c0_1, %c0_2] : memref<32x32xf32, #tpu.memory_space<vmem>>, vector<32x32xf32>
    %c0_3 = arith.constant 0 : index
    %c0_4 = arith.constant 0 : index
    %2 = vector.load %arg5[%c0_3, %c0_4] : memref<32x32xf32, #tpu.memory_space<vmem>>, vector<32x32xf32>
    %c0_5 = arith.constant 0 : index
    %c0_6 = arith.constant 0 : index
    %3 = vector.load %arg7[%c0_5, %c0_6] : memref<32x4xf32, #tpu.memory_space<vmem>>, vector<32x4xf32>
    %c0_7 = arith.constant 0 : index
    %c0_8 = arith.constant 0 : index
    %4 = vector.load %arg2[%c0_7, %c0_8] : memref<1x32xf32, #tpu.memory_space<vmem>>, vector<1x32xf32>
    %5 = vector.shape_cast %4 : vector<1x32xf32> to vector<1x32xf32>
    %6 = vector.broadcast %5 : vector<1x32xf32> to vector<4x32xf32>
    %c0_9 = arith.constant 0 : index
    %c0_10 = arith.constant 0 : index
    %7 = vector.load %arg4[%c0_9, %c0_10] : memref<1x32xf32, #tpu.memory_space<vmem>>, vector<1x32xf32>
    %8 = vector.shape_cast %7 : vector<1x32xf32> to vector<1x32xf32>
    %9 = vector.broadcast %8 : vector<1x32xf32> to vector<4x32xf32>
    %c0_11 = arith.constant 0 : index
    %c0_12 = arith.constant 0 : index
    %10 = vector.load %arg6[%c0_11, %c0_12] : memref<1x32xf32, #tpu.memory_space<vmem>>, vector<1x32xf32>
    %11 = vector.shape_cast %10 : vector<1x32xf32> to vector<1x32xf32>
    %12 = vector.broadcast %11 : vector<1x32xf32> to vector<4x32xf32>
    %c0_13 = arith.constant 0 : index
    %c0_14 = arith.constant 0 : index
    %13 = vector.load %arg8[%c0_13, %c0_14] : memref<1x4xf32, #tpu.memory_space<vmem>>, vector<1x4xf32>
    %14 = vector.shape_cast %13 : vector<1x4xf32> to vector<1x4xf32>
    %15 = vector.broadcast %14 : vector<1x4xf32> to vector<4x4xf32>
    %cst = arith.constant 0.000000e+00 : f32
    %16 = vector.broadcast %cst : f32 to vector<4x32xf32>
    %cst_15 = arith.constant 0.000000e+00 : f32
    %17 = vector.broadcast %cst_15 : f32 to vector<4x32xf32>
    %cst_16 = arith.constant 0.000000e+00 : f32
    %18 = vector.broadcast %cst_16 : f32 to vector<4x32xf32>
    %cst_17 = arith.constant 0.000000e+00 : f32
    %19 = vector.broadcast %cst_17 : f32 to vector<4x32xf32>
    %cst_18 = arith.constant 0.000000e+00 : f32
    %20 = vector.broadcast %cst_18 : f32 to vector<4x32xf32>
    %cst_19 = arith.constant 0.000000e+00 : f32
    %21 = vector.broadcast %cst_19 : f32 to vector<4x32xf32>
    %cst_20 = arith.constant 0.000000e+00 : f32
    %22 = vector.broadcast %cst_20 : f32 to vector<4x32xf32>
    %cst_21 = arith.constant 0.000000e+00 : f32
    %23 = vector.broadcast %cst_21 : f32 to vector<4x32xf32>
    %cst_22 = arith.constant 0.000000e+00 : f32
    %24 = vector.broadcast %cst_22 : f32 to vector<4x32xf32>
    %cst_23 = arith.constant 0.000000e+00 : f32
    %25 = vector.broadcast %cst_23 : f32 to vector<4x4xf32>
    %cst_24 = arith.constant 0.000000e+00 : f32
    %26 = vector.broadcast %cst_24 : f32 to vector<4x4xf32>
    %cst_25 = arith.constant 0.000000e+00 : f32
    %27 = vector.broadcast %cst_25 : f32 to vector<4x4xf32>
    %cst_26 = arith.constant 0.000000e+00 : f32
    %28 = vector.broadcast %cst_26 : f32 to vector<4x4xf32>
    %c0_27 = arith.constant 0 : index
    %c0_28 = arith.constant 0 : index
    %c0_29 = arith.constant 0 : index
    %29 = vector.load %arg0[%c0_27, %c0_28, %c0_29] : memref<8x4x8xf32, #tpu.memory_space<vmem>>, vector<1x4x8xf32>
    %30 = vector.shape_cast %29 : vector<1x4x8xf32> to vector<4x8xf32>
    %cst_30 = arith.constant dense<0.000000e+00> : vector<4x32xf32>
    %31 = tpu.matmul %30, %0, %cst_30 {dimension_numbers = #tpu.dot_dimension_numbers<[1], [0], [0], [1], [0, 0, 1, 1], [], []>} : vector<4x8xf32>, vector<8x32xf32>, vector<4x32xf32> -> vector<4x32xf32>
    %32 = arith.addf %31, %6 : vector<4x32xf32>
    %cst_31 = arith.constant 5.000000e-01 : f32
    %33 = vector.broadcast %cst_31 : f32 to vector<4x32xf32>
    %34 = arith.mulf %16, %33 : vector<4x32xf32>
    %35 = arith.addf %34, %32 : vector<4x32xf32>
    %cst_32 = arith.constant 0.000000e+00 : f32
    %36 = vector.broadcast %cst_32 : f32 to vector<4x32xf32>
    %37 = arith.cmpf ogt, %18, %36 : vector<4x32xf32>
    %cst_33 = arith.constant 7.500000e-01 : f32
    %38 = vector.broadcast %cst_33 : f32 to vector<4x32xf32>
    %39 = arith.mulf %17, %38 : vector<4x32xf32>
    %cst_34 = arith.constant 0.000000e+00 : f32
    %40 = vector.broadcast %cst_34 : f32 to vector<4x32xf32>
    %41 = arith.select %37, %40, %39 : vector<4x32xi1>, vector<4x32xf32>
    %42 = arith.addf %41, %35 : vector<4x32xf32>
    %cst_35 = arith.constant 5.000000e-01 : f32
    %43 = vector.broadcast %cst_35 : f32 to vector<4x32xf32>
    %44 = arith.cmpf ogt, %42, %43 : vector<4x32xf32>
    %45 = arith.extui %44 : vector<4x32xi1> to vector<4x32xi32>
    %46 = arith.sitofp %45 : vector<4x32xi32> to vector<4x32xf32>
    %cst_36 = arith.constant dense<0.000000e+00> : vector<4x32xf32>
    %47 = tpu.matmul %46, %1, %cst_36 {dimension_numbers = #tpu.dot_dimension_numbers<[1], [0], [0], [1], [0, 0, 1, 1], [], []>} : vector<4x32xf32>, vector<32x32xf32>, vector<4x32xf32> -> vector<4x32xf32>
    %48 = arith.addf %47, %9 : vector<4x32xf32>
    %cst_37 = arith.constant 5.000000e-01 : f32
    %49 = vector.broadcast %cst_37 : f32 to vector<4x32xf32>
    %50 = arith.mulf %19, %49 : vector<4x32xf32>
    %51 = arith.addf %50, %48 : vector<4x32xf32>
    %cst_38 = arith.constant 0.000000e+00 : f32
    %52 = vector.broadcast %cst_38 : f32 to vector<4x32xf32>
    %53 = arith.cmpf ogt, %21, %52 : vector<4x32xf32>
    %cst_39 = arith.constant 7.500000e-01 : f32
    %54 = vector.broadcast %cst_39 : f32 to vector<4x32xf32>
    %55 = arith.mulf %20, %54 : vector<4x32xf32>
    %cst_40 = arith.constant 0.000000e+00 : f32
    %56 = vector.broadcast %cst_40 : f32 to vector<4x32xf32>
    %57 = arith.select %53, %56, %55 : vector<4x32xi1>, vector<4x32xf32>
    %58 = arith.addf %57, %51 : vector<4x32xf32>
    %cst_41 = arith.constant 5.000000e-01 : f32
    %59 = vector.broadcast %cst_41 : f32 to vector<4x32xf32>
    %60 = arith.cmpf ogt, %58, %59 : vector<4x32xf32>
    %61 = arith.extui %60 : vector<4x32xi1> to vector<4x32xi32>
    %62 = arith.sitofp %61 : vector<4x32xi32> to vector<4x32xf32>
    %cst_42 = arith.constant dense<0.000000e+00> : vector<4x32xf32>
    %63 = tpu.matmul %62, %2, %cst_42 {dimension_numbers = #tpu.dot_dimension_numbers<[1], [0], [0], [1], [0, 0, 1, 1], [], []>} : vector<4x32xf32>, vector<32x32xf32>, vector<4x32xf32> -> vector<4x32xf32>
    %64 = arith.addf %63, %12 : vector<4x32xf32>
    %cst_43 = arith.constant 5.000000e-01 : f32
    %65 = vector.broadcast %cst_43 : f32 to vector<4x32xf32>
    %66 = arith.mulf %22, %65 : vector<4x32xf32>
    %67 = arith.addf %66, %64 : vector<4x32xf32>
    %cst_44 = arith.constant 0.000000e+00 : f32
    %68 = vector.broadcast %cst_44 : f32 to vector<4x32xf32>
    %69 = arith.cmpf ogt, %24, %68 : vector<4x32xf32>
    %cst_45 = arith.constant 7.500000e-01 : f32
    %70 = vector.broadcast %cst_45 : f32 to vector<4x32xf32>
    %71 = arith.mulf %23, %70 : vector<4x32xf32>
    %cst_46 = arith.constant 0.000000e+00 : f32
    %72 = vector.broadcast %cst_46 : f32 to vector<4x32xf32>
    %73 = arith.select %69, %72, %71 : vector<4x32xi1>, vector<4x32xf32>
    %74 = arith.addf %73, %67 : vector<4x32xf32>
    %cst_47 = arith.constant 5.000000e-01 : f32
    %75 = vector.broadcast %cst_47 : f32 to vector<4x32xf32>
    %76 = arith.cmpf ogt, %74, %75 : vector<4x32xf32>
    %77 = arith.extui %76 : vector<4x32xi1> to vector<4x32xi32>
    %78 = arith.sitofp %77 : vector<4x32xi32> to vector<4x32xf32>
    %cst_48 = arith.constant dense<0.000000e+00> : vector<4x4xf32>
    %79 = tpu.matmul %78, %3, %cst_48 {dimension_numbers = #tpu.dot_dimension_numbers<[1], [0], [0], [1], [0, 0, 1, 1], [], []>} : vector<4x32xf32>, vector<32x4xf32>, vector<4x4xf32> -> vector<4x4xf32>
    %80 = arith.addf %79, %15 : vector<4x4xf32>
    %cst_49 = arith.constant 5.000000e-01 : f32
    %81 = vector.broadcast %cst_49 : f32 to vector<4x4xf32>
    %82 = arith.mulf %25, %81 : vector<4x4xf32>
    %83 = arith.addf %82, %80 : vector<4x4xf32>
    %cst_50 = arith.constant 0.000000e+00 : f32
    %84 = vector.broadcast %cst_50 : f32 to vector<4x4xf32>
    %85 = arith.cmpf ogt, %27, %84 : vector<4x4xf32>
    %cst_51 = arith.constant 7.500000e-01 : f32
    %86 = vector.broadcast %cst_51 : f32 to vector<4x4xf32>
    %87 = arith.mulf %26, %86 : vector<4x4xf32>
    %cst_52 = arith.constant 0.000000e+00 : f32
    %88 = vector.broadcast %cst_52 : f32 to vector<4x4xf32>
    %89 = arith.select %85, %88, %87 : vector<4x4xi1>, vector<4x4xf32>
    %90 = arith.addf %89, %83 : vector<4x4xf32>
    %cst_53 = arith.constant 5.000000e-01 : f32
    %91 = vector.broadcast %cst_53 : f32 to vector<4x4xf32>
    %92 = arith.cmpf ogt, %90, %91 : vector<4x4xf32>
    %93 = arith.extui %92 : vector<4x4xi1> to vector<4x4xi32>
    %94 = arith.sitofp %93 : vector<4x4xi32> to vector<4x4xf32>
    %95 = arith.addf %28, %94 : vector<4x4xf32>
    %c1 = arith.constant 1 : index
    %c0_54 = arith.constant 0 : index
    %c0_55 = arith.constant 0 : index
    %96 = vector.load %arg0[%c1, %c0_54, %c0_55] : memref<8x4x8xf32, #tpu.memory_space<vmem>>, vector<1x4x8xf32>
    %97 = vector.shape_cast %96 : vector<1x4x8xf32> to vector<4x8xf32>
    %cst_56 = arith.constant dense<0.000000e+00> : vector<4x32xf32>
    %98 = tpu.matmul %97, %0, %cst_56 {dimension_numbers = #tpu.dot_dimension_numbers<[1], [0], [0], [1], [0, 0, 1, 1], [], []>} : vector<4x8xf32>, vector<8x32xf32>, vector<4x32xf32> -> vector<4x32xf32>
    %99 = arith.addf %98, %6 : vector<4x32xf32>
    %cst_57 = arith.constant 5.000000e-01 : f32
    %100 = vector.broadcast %cst_57 : f32 to vector<4x32xf32>
    %101 = arith.mulf %35, %100 : vector<4x32xf32>
    %102 = arith.addf %101, %99 : vector<4x32xf32>
    %cst_58 = arith.constant 0.000000e+00 : f32
    %103 = vector.broadcast %cst_58 : f32 to vector<4x32xf32>
    %104 = arith.cmpf ogt, %46, %103 : vector<4x32xf32>
    %cst_59 = arith.constant 7.500000e-01 : f32
    %105 = vector.broadcast %cst_59 : f32 to vector<4x32xf32>
    %106 = arith.mulf %42, %105 : vector<4x32xf32>
    %cst_60 = arith.constant 0.000000e+00 : f32
    %107 = vector.broadcast %cst_60 : f32 to vector<4x32xf32>
    %108 = arith.select %104, %107, %106 : vector<4x32xi1>, vector<4x32xf32>
    %109 = arith.addf %108, %102 : vector<4x32xf32>
    %cst_61 = arith.constant 5.000000e-01 : f32
    %110 = vector.broadcast %cst_61 : f32 to vector<4x32xf32>
    %111 = arith.cmpf ogt, %109, %110 : vector<4x32xf32>
    %112 = arith.extui %111 : vector<4x32xi1> to vector<4x32xi32>
    %113 = arith.sitofp %112 : vector<4x32xi32> to vector<4x32xf32>
    %cst_62 = arith.constant dense<0.000000e+00> : vector<4x32xf32>
    %114 = tpu.matmul %113, %1, %cst_62 {dimension_numbers = #tpu.dot_dimension_numbers<[1], [0], [0], [1], [0, 0, 1, 1], [], []>} : vector<4x32xf32>, vector<32x32xf32>, vector<4x32xf32> -> vector<4x32xf32>
    %115 = arith.addf %114, %9 : vector<4x32xf32>
    %cst_63 = arith.constant 5.000000e-01 : f32
    %116 = vector.broadcast %cst_63 : f32 to vector<4x32xf32>
    %117 = arith.mulf %51, %116 : vector<4x32xf32>
    %118 = arith.addf %117, %115 : vector<4x32xf32>
    %cst_64 = arith.constant 0.000000e+00 : f32
    %119 = vector.broadcast %cst_64 : f32 to vector<4x32xf32>
    %120 = arith.cmpf ogt, %62, %119 : vector<4x32xf32>
    %cst_65 = arith.constant 7.500000e-01 : f32
    %121 = vector.broadcast %cst_65 : f32 to vector<4x32xf32>
    %122 = arith.mulf %58, %121 : vector<4x32xf32>
    %cst_66 = arith.constant 0.000000e+00 : f32
    %123 = vector.broadcast %cst_66 : f32 to vector<4x32xf32>
    %124 = arith.select %120, %123, %122 : vector<4x32xi1>, vector<4x32xf32>
    %125 = arith.addf %124, %118 : vector<4x32xf32>
    %cst_67 = arith.constant 5.000000e-01 : f32
    %126 = vector.broadcast %cst_67 : f32 to vector<4x32xf32>
    %127 = arith.cmpf ogt, %125, %126 : vector<4x32xf32>
    %128 = arith.extui %127 : vector<4x32xi1> to vector<4x32xi32>
    %129 = arith.sitofp %128 : vector<4x32xi32> to vector<4x32xf32>
    %cst_68 = arith.constant dense<0.000000e+00> : vector<4x32xf32>
    %130 = tpu.matmul %129, %2, %cst_68 {dimension_numbers = #tpu.dot_dimension_numbers<[1], [0], [0], [1], [0, 0, 1, 1], [], []>} : vector<4x32xf32>, vector<32x32xf32>, vector<4x32xf32> -> vector<4x32xf32>
    %131 = arith.addf %130, %12 : vector<4x32xf32>
    %cst_69 = arith.constant 5.000000e-01 : f32
    %132 = vector.broadcast %cst_69 : f32 to vector<4x32xf32>
    %133 = arith.mulf %67, %132 : vector<4x32xf32>
    %134 = arith.addf %133, %131 : vector<4x32xf32>
    %cst_70 = arith.constant 0.000000e+00 : f32
    %135 = vector.broadcast %cst_70 : f32 to vector<4x32xf32>
    %136 = arith.cmpf ogt, %78, %135 : vector<4x32xf32>
    %cst_71 = arith.constant 7.500000e-01 : f32
    %137 = vector.broadcast %cst_71 : f32 to vector<4x32xf32>
    %138 = arith.mulf %74, %137 : vector<4x32xf32>
    %cst_72 = arith.constant 0.000000e+00 : f32
    %139 = vector.broadcast %cst_72 : f32 to vector<4x32xf32>
    %140 = arith.select %136, %139, %138 : vector<4x32xi1>, vector<4x32xf32>
    %141 = arith.addf %140, %134 : vector<4x32xf32>
    %cst_73 = arith.constant 5.000000e-01 : f32
    %142 = vector.broadcast %cst_73 : f32 to vector<4x32xf32>
    %143 = arith.cmpf ogt, %141, %142 : vector<4x32xf32>
    %144 = arith.extui %143 : vector<4x32xi1> to vector<4x32xi32>
    %145 = arith.sitofp %144 : vector<4x32xi32> to vector<4x32xf32>
    %cst_74 = arith.constant dense<0.000000e+00> : vector<4x4xf32>
    %146 = tpu.matmul %145, %3, %cst_74 {dimension_numbers = #tpu.dot_dimension_numbers<[1], [0], [0], [1], [0, 0, 1, 1], [], []>} : vector<4x32xf32>, vector<32x4xf32>, vector<4x4xf32> -> vector<4x4xf32>
    %147 = arith.addf %146, %15 : vector<4x4xf32>
    %cst_75 = arith.constant 5.000000e-01 : f32
    %148 = vector.broadcast %cst_75 : f32 to vector<4x4xf32>
    %149 = arith.mulf %83, %148 : vector<4x4xf32>
    %150 = arith.addf %149, %147 : vector<4x4xf32>
    %cst_76 = arith.constant 0.000000e+00 : f32
    %151 = vector.broadcast %cst_76 : f32 to vector<4x4xf32>
    %152 = arith.cmpf ogt, %94, %151 : vector<4x4xf32>
    %cst_77 = arith.constant 7.500000e-01 : f32
    %153 = vector.broadcast %cst_77 : f32 to vector<4x4xf32>
    %154 = arith.mulf %90, %153 : vector<4x4xf32>
    %cst_78 = arith.constant 0.000000e+00 : f32
    %155 = vector.broadcast %cst_78 : f32 to vector<4x4xf32>
    %156 = arith.select %152, %155, %154 : vector<4x4xi1>, vector<4x4xf32>
    %157 = arith.addf %156, %150 : vector<4x4xf32>
    %cst_79 = arith.constant 5.000000e-01 : f32
    %158 = vector.broadcast %cst_79 : f32 to vector<4x4xf32>
    %159 = arith.cmpf ogt, %157, %158 : vector<4x4xf32>
    %160 = arith.extui %159 : vector<4x4xi1> to vector<4x4xi32>
    %161 = arith.sitofp %160 : vector<4x4xi32> to vector<4x4xf32>
    %162 = arith.addf %95, %161 : vector<4x4xf32>
    %c2 = arith.constant 2 : index
    %c0_80 = arith.constant 0 : index
    %c0_81 = arith.constant 0 : index
    %163 = vector.load %arg0[%c2, %c0_80, %c0_81] : memref<8x4x8xf32, #tpu.memory_space<vmem>>, vector<1x4x8xf32>
    %164 = vector.shape_cast %163 : vector<1x4x8xf32> to vector<4x8xf32>
    %cst_82 = arith.constant dense<0.000000e+00> : vector<4x32xf32>
    %165 = tpu.matmul %164, %0, %cst_82 {dimension_numbers = #tpu.dot_dimension_numbers<[1], [0], [0], [1], [0, 0, 1, 1], [], []>} : vector<4x8xf32>, vector<8x32xf32>, vector<4x32xf32> -> vector<4x32xf32>
    %166 = arith.addf %165, %6 : vector<4x32xf32>
    %cst_83 = arith.constant 5.000000e-01 : f32
    %167 = vector.broadcast %cst_83 : f32 to vector<4x32xf32>
    %168 = arith.mulf %102, %167 : vector<4x32xf32>
    %169 = arith.addf %168, %166 : vector<4x32xf32>
    %cst_84 = arith.constant 0.000000e+00 : f32
    %170 = vector.broadcast %cst_84 : f32 to vector<4x32xf32>
    %171 = arith.cmpf ogt, %113, %170 : vector<4x32xf32>
    %cst_85 = arith.constant 7.500000e-01 : f32
    %172 = vector.broadcast %cst_85 : f32 to vector<4x32xf32>
    %173 = arith.mulf %109, %172 : vector<4x32xf32>
    %cst_86 = arith.constant 0.000000e+00 : f32
    %174 = vector.broadcast %cst_86 : f32 to vector<4x32xf32>
    %175 = arith.select %171, %174, %173 : vector<4x32xi1>, vector<4x32xf32>
    %176 = arith.addf %175, %169 : vector<4x32xf32>
    %cst_87 = arith.constant 5.000000e-01 : f32
    %177 = vector.broadcast %cst_87 : f32 to vector<4x32xf32>
    %178 = arith.cmpf ogt, %176, %177 : vector<4x32xf32>
    %179 = arith.extui %178 : vector<4x32xi1> to vector<4x32xi32>
    %180 = arith.sitofp %179 : vector<4x32xi32> to vector<4x32xf32>
    %cst_88 = arith.constant dense<0.000000e+00> : vector<4x32xf32>
    %181 = tpu.matmul %180, %1, %cst_88 {dimension_numbers = #tpu.dot_dimension_numbers<[1], [0], [0], [1], [0, 0, 1, 1], [], []>} : vector<4x32xf32>, vector<32x32xf32>, vector<4x32xf32> -> vector<4x32xf32>
    %182 = arith.addf %181, %9 : vector<4x32xf32>
    %cst_89 = arith.constant 5.000000e-01 : f32
    %183 = vector.broadcast %cst_89 : f32 to vector<4x32xf32>
    %184 = arith.mulf %118, %183 : vector<4x32xf32>
    %185 = arith.addf %184, %182 : vector<4x32xf32>
    %cst_90 = arith.constant 0.000000e+00 : f32
    %186 = vector.broadcast %cst_90 : f32 to vector<4x32xf32>
    %187 = arith.cmpf ogt, %129, %186 : vector<4x32xf32>
    %cst_91 = arith.constant 7.500000e-01 : f32
    %188 = vector.broadcast %cst_91 : f32 to vector<4x32xf32>
    %189 = arith.mulf %125, %188 : vector<4x32xf32>
    %cst_92 = arith.constant 0.000000e+00 : f32
    %190 = vector.broadcast %cst_92 : f32 to vector<4x32xf32>
    %191 = arith.select %187, %190, %189 : vector<4x32xi1>, vector<4x32xf32>
    %192 = arith.addf %191, %185 : vector<4x32xf32>
    %cst_93 = arith.constant 5.000000e-01 : f32
    %193 = vector.broadcast %cst_93 : f32 to vector<4x32xf32>
    %194 = arith.cmpf ogt, %192, %193 : vector<4x32xf32>
    %195 = arith.extui %194 : vector<4x32xi1> to vector<4x32xi32>
    %196 = arith.sitofp %195 : vector<4x32xi32> to vector<4x32xf32>
    %cst_94 = arith.constant dense<0.000000e+00> : vector<4x32xf32>
    %197 = tpu.matmul %196, %2, %cst_94 {dimension_numbers = #tpu.dot_dimension_numbers<[1], [0], [0], [1], [0, 0, 1, 1], [], []>} : vector<4x32xf32>, vector<32x32xf32>, vector<4x32xf32> -> vector<4x32xf32>
    %198 = arith.addf %197, %12 : vector<4x32xf32>
    %cst_95 = arith.constant 5.000000e-01 : f32
    %199 = vector.broadcast %cst_95 : f32 to vector<4x32xf32>
    %200 = arith.mulf %134, %199 : vector<4x32xf32>
    %201 = arith.addf %200, %198 : vector<4x32xf32>
    %cst_96 = arith.constant 0.000000e+00 : f32
    %202 = vector.broadcast %cst_96 : f32 to vector<4x32xf32>
    %203 = arith.cmpf ogt, %145, %202 : vector<4x32xf32>
    %cst_97 = arith.constant 7.500000e-01 : f32
    %204 = vector.broadcast %cst_97 : f32 to vector<4x32xf32>
    %205 = arith.mulf %141, %204 : vector<4x32xf32>
    %cst_98 = arith.constant 0.000000e+00 : f32
    %206 = vector.broadcast %cst_98 : f32 to vector<4x32xf32>
    %207 = arith.select %203, %206, %205 : vector<4x32xi1>, vector<4x32xf32>
    %208 = arith.addf %207, %201 : vector<4x32xf32>
    %cst_99 = arith.constant 5.000000e-01 : f32
    %209 = vector.broadcast %cst_99 : f32 to vector<4x32xf32>
    %210 = arith.cmpf ogt, %208, %209 : vector<4x32xf32>
    %211 = arith.extui %210 : vector<4x32xi1> to vector<4x32xi32>
    %212 = arith.sitofp %211 : vector<4x32xi32> to vector<4x32xf32>
    %cst_100 = arith.constant dense<0.000000e+00> : vector<4x4xf32>
    %213 = tpu.matmul %212, %3, %cst_100 {dimension_numbers = #tpu.dot_dimension_numbers<[1], [0], [0], [1], [0, 0, 1, 1], [], []>} : vector<4x32xf32>, vector<32x4xf32>, vector<4x4xf32> -> vector<4x4xf32>
    %214 = arith.addf %213, %15 : vector<4x4xf32>
    %cst_101 = arith.constant 5.000000e-01 : f32
    %215 = vector.broadcast %cst_101 : f32 to vector<4x4xf32>
    %216 = arith.mulf %150, %215 : vector<4x4xf32>
    %217 = arith.addf %216, %214 : vector<4x4xf32>
    %cst_102 = arith.constant 0.000000e+00 : f32
    %218 = vector.broadcast %cst_102 : f32 to vector<4x4xf32>
    %219 = arith.cmpf ogt, %161, %218 : vector<4x4xf32>
    %cst_103 = arith.constant 7.500000e-01 : f32
    %220 = vector.broadcast %cst_103 : f32 to vector<4x4xf32>
    %221 = arith.mulf %157, %220 : vector<4x4xf32>
    %cst_104 = arith.constant 0.000000e+00 : f32
    %222 = vector.broadcast %cst_104 : f32 to vector<4x4xf32>
    %223 = arith.select %219, %222, %221 : vector<4x4xi1>, vector<4x4xf32>
    %224 = arith.addf %223, %217 : vector<4x4xf32>
    %cst_105 = arith.constant 5.000000e-01 : f32
    %225 = vector.broadcast %cst_105 : f32 to vector<4x4xf32>
    %226 = arith.cmpf ogt, %224, %225 : vector<4x4xf32>
    %227 = arith.extui %226 : vector<4x4xi1> to vector<4x4xi32>
    %228 = arith.sitofp %227 : vector<4x4xi32> to vector<4x4xf32>
    %229 = arith.addf %162, %228 : vector<4x4xf32>
    %c3 = arith.constant 3 : index
    %c0_106 = arith.constant 0 : index
    %c0_107 = arith.constant 0 : index
    %230 = vector.load %arg0[%c3, %c0_106, %c0_107] : memref<8x4x8xf32, #tpu.memory_space<vmem>>, vector<1x4x8xf32>
    %231 = vector.shape_cast %230 : vector<1x4x8xf32> to vector<4x8xf32>
    %cst_108 = arith.constant dense<0.000000e+00> : vector<4x32xf32>
    %232 = tpu.matmul %231, %0, %cst_108 {dimension_numbers = #tpu.dot_dimension_numbers<[1], [0], [0], [1], [0, 0, 1, 1], [], []>} : vector<4x8xf32>, vector<8x32xf32>, vector<4x32xf32> -> vector<4x32xf32>
    %233 = arith.addf %232, %6 : vector<4x32xf32>
    %cst_109 = arith.constant 5.000000e-01 : f32
    %234 = vector.broadcast %cst_109 : f32 to vector<4x32xf32>
    %235 = arith.mulf %169, %234 : vector<4x32xf32>
    %236 = arith.addf %235, %233 : vector<4x32xf32>
    %cst_110 = arith.constant 0.000000e+00 : f32
    %237 = vector.broadcast %cst_110 : f32 to vector<4x32xf32>
    %238 = arith.cmpf ogt, %180, %237 : vector<4x32xf32>
    %cst_111 = arith.constant 7.500000e-01 : f32
    %239 = vector.broadcast %cst_111 : f32 to vector<4x32xf32>
    %240 = arith.mulf %176, %239 : vector<4x32xf32>
    %cst_112 = arith.constant 0.000000e+00 : f32
    %241 = vector.broadcast %cst_112 : f32 to vector<4x32xf32>
    %242 = arith.select %238, %241, %240 : vector<4x32xi1>, vector<4x32xf32>
    %243 = arith.addf %242, %236 : vector<4x32xf32>
    %cst_113 = arith.constant 5.000000e-01 : f32
    %244 = vector.broadcast %cst_113 : f32 to vector<4x32xf32>
    %245 = arith.cmpf ogt, %243, %244 : vector<4x32xf32>
    %246 = arith.extui %245 : vector<4x32xi1> to vector<4x32xi32>
    %247 = arith.sitofp %246 : vector<4x32xi32> to vector<4x32xf32>
    %cst_114 = arith.constant dense<0.000000e+00> : vector<4x32xf32>
    %248 = tpu.matmul %247, %1, %cst_114 {dimension_numbers = #tpu.dot_dimension_numbers<[1], [0], [0], [1], [0, 0, 1, 1], [], []>} : vector<4x32xf32>, vector<32x32xf32>, vector<4x32xf32> -> vector<4x32xf32>
    %249 = arith.addf %248, %9 : vector<4x32xf32>
    %cst_115 = arith.constant 5.000000e-01 : f32
    %250 = vector.broadcast %cst_115 : f32 to vector<4x32xf32>
    %251 = arith.mulf %185, %250 : vector<4x32xf32>
    %252 = arith.addf %251, %249 : vector<4x32xf32>
    %cst_116 = arith.constant 0.000000e+00 : f32
    %253 = vector.broadcast %cst_116 : f32 to vector<4x32xf32>
    %254 = arith.cmpf ogt, %196, %253 : vector<4x32xf32>
    %cst_117 = arith.constant 7.500000e-01 : f32
    %255 = vector.broadcast %cst_117 : f32 to vector<4x32xf32>
    %256 = arith.mulf %192, %255 : vector<4x32xf32>
    %cst_118 = arith.constant 0.000000e+00 : f32
    %257 = vector.broadcast %cst_118 : f32 to vector<4x32xf32>
    %258 = arith.select %254, %257, %256 : vector<4x32xi1>, vector<4x32xf32>
    %259 = arith.addf %258, %252 : vector<4x32xf32>
    %cst_119 = arith.constant 5.000000e-01 : f32
    %260 = vector.broadcast %cst_119 : f32 to vector<4x32xf32>
    %261 = arith.cmpf ogt, %259, %260 : vector<4x32xf32>
    %262 = arith.extui %261 : vector<4x32xi1> to vector<4x32xi32>
    %263 = arith.sitofp %262 : vector<4x32xi32> to vector<4x32xf32>
    %cst_120 = arith.constant dense<0.000000e+00> : vector<4x32xf32>
    %264 = tpu.matmul %263, %2, %cst_120 {dimension_numbers = #tpu.dot_dimension_numbers<[1], [0], [0], [1], [0, 0, 1, 1], [], []>} : vector<4x32xf32>, vector<32x32xf32>, vector<4x32xf32> -> vector<4x32xf32>
    %265 = arith.addf %264, %12 : vector<4x32xf32>
    %cst_121 = arith.constant 5.000000e-01 : f32
    %266 = vector.broadcast %cst_121 : f32 to vector<4x32xf32>
    %267 = arith.mulf %201, %266 : vector<4x32xf32>
    %268 = arith.addf %267, %265 : vector<4x32xf32>
    %cst_122 = arith.constant 0.000000e+00 : f32
    %269 = vector.broadcast %cst_122 : f32 to vector<4x32xf32>
    %270 = arith.cmpf ogt, %212, %269 : vector<4x32xf32>
    %cst_123 = arith.constant 7.500000e-01 : f32
    %271 = vector.broadcast %cst_123 : f32 to vector<4x32xf32>
    %272 = arith.mulf %208, %271 : vector<4x32xf32>
    %cst_124 = arith.constant 0.000000e+00 : f32
    %273 = vector.broadcast %cst_124 : f32 to vector<4x32xf32>
    %274 = arith.select %270, %273, %272 : vector<4x32xi1>, vector<4x32xf32>
    %275 = arith.addf %274, %268 : vector<4x32xf32>
    %cst_125 = arith.constant 5.000000e-01 : f32
    %276 = vector.broadcast %cst_125 : f32 to vector<4x32xf32>
    %277 = arith.cmpf ogt, %275, %276 : vector<4x32xf32>
    %278 = arith.extui %277 : vector<4x32xi1> to vector<4x32xi32>
    %279 = arith.sitofp %278 : vector<4x32xi32> to vector<4x32xf32>
    %cst_126 = arith.constant dense<0.000000e+00> : vector<4x4xf32>
    %280 = tpu.matmul %279, %3, %cst_126 {dimension_numbers = #tpu.dot_dimension_numbers<[1], [0], [0], [1], [0, 0, 1, 1], [], []>} : vector<4x32xf32>, vector<32x4xf32>, vector<4x4xf32> -> vector<4x4xf32>
    %281 = arith.addf %280, %15 : vector<4x4xf32>
    %cst_127 = arith.constant 5.000000e-01 : f32
    %282 = vector.broadcast %cst_127 : f32 to vector<4x4xf32>
    %283 = arith.mulf %217, %282 : vector<4x4xf32>
    %284 = arith.addf %283, %281 : vector<4x4xf32>
    %cst_128 = arith.constant 0.000000e+00 : f32
    %285 = vector.broadcast %cst_128 : f32 to vector<4x4xf32>
    %286 = arith.cmpf ogt, %228, %285 : vector<4x4xf32>
    %cst_129 = arith.constant 7.500000e-01 : f32
    %287 = vector.broadcast %cst_129 : f32 to vector<4x4xf32>
    %288 = arith.mulf %224, %287 : vector<4x4xf32>
    %cst_130 = arith.constant 0.000000e+00 : f32
    %289 = vector.broadcast %cst_130 : f32 to vector<4x4xf32>
    %290 = arith.select %286, %289, %288 : vector<4x4xi1>, vector<4x4xf32>
    %291 = arith.addf %290, %284 : vector<4x4xf32>
    %cst_131 = arith.constant 5.000000e-01 : f32
    %292 = vector.broadcast %cst_131 : f32 to vector<4x4xf32>
    %293 = arith.cmpf ogt, %291, %292 : vector<4x4xf32>
    %294 = arith.extui %293 : vector<4x4xi1> to vector<4x4xi32>
    %295 = arith.sitofp %294 : vector<4x4xi32> to vector<4x4xf32>
    %296 = arith.addf %229, %295 : vector<4x4xf32>
    %c4 = arith.constant 4 : index
    %c0_132 = arith.constant 0 : index
    %c0_133 = arith.constant 0 : index
    %297 = vector.load %arg0[%c4, %c0_132, %c0_133] : memref<8x4x8xf32, #tpu.memory_space<vmem>>, vector<1x4x8xf32>
    %298 = vector.shape_cast %297 : vector<1x4x8xf32> to vector<4x8xf32>
    %cst_134 = arith.constant dense<0.000000e+00> : vector<4x32xf32>
    %299 = tpu.matmul %298, %0, %cst_134 {dimension_numbers = #tpu.dot_dimension_numbers<[1], [0], [0], [1], [0, 0, 1, 1], [], []>} : vector<4x8xf32>, vector<8x32xf32>, vector<4x32xf32> -> vector<4x32xf32>
    %300 = arith.addf %299, %6 : vector<4x32xf32>
    %cst_135 = arith.constant 5.000000e-01 : f32
    %301 = vector.broadcast %cst_135 : f32 to vector<4x32xf32>
    %302 = arith.mulf %236, %301 : vector<4x32xf32>
    %303 = arith.addf %302, %300 : vector<4x32xf32>
    %cst_136 = arith.constant 0.000000e+00 : f32
    %304 = vector.broadcast %cst_136 : f32 to vector<4x32xf32>
    %305 = arith.cmpf ogt, %247, %304 : vector<4x32xf32>
    %cst_137 = arith.constant 7.500000e-01 : f32
    %306 = vector.broadcast %cst_137 : f32 to vector<4x32xf32>
    %307 = arith.mulf %243, %306 : vector<4x32xf32>
    %cst_138 = arith.constant 0.000000e+00 : f32
    %308 = vector.broadcast %cst_138 : f32 to vector<4x32xf32>
    %309 = arith.select %305, %308, %307 : vector<4x32xi1>, vector<4x32xf32>
    %310 = arith.addf %309, %303 : vector<4x32xf32>
    %cst_139 = arith.constant 5.000000e-01 : f32
    %311 = vector.broadcast %cst_139 : f32 to vector<4x32xf32>
    %312 = arith.cmpf ogt, %310, %311 : vector<4x32xf32>
    %313 = arith.extui %312 : vector<4x32xi1> to vector<4x32xi32>
    %314 = arith.sitofp %313 : vector<4x32xi32> to vector<4x32xf32>
    %cst_140 = arith.constant dense<0.000000e+00> : vector<4x32xf32>
    %315 = tpu.matmul %314, %1, %cst_140 {dimension_numbers = #tpu.dot_dimension_numbers<[1], [0], [0], [1], [0, 0, 1, 1], [], []>} : vector<4x32xf32>, vector<32x32xf32>, vector<4x32xf32> -> vector<4x32xf32>
    %316 = arith.addf %315, %9 : vector<4x32xf32>
    %cst_141 = arith.constant 5.000000e-01 : f32
    %317 = vector.broadcast %cst_141 : f32 to vector<4x32xf32>
    %318 = arith.mulf %252, %317 : vector<4x32xf32>
    %319 = arith.addf %318, %316 : vector<4x32xf32>
    %cst_142 = arith.constant 0.000000e+00 : f32
    %320 = vector.broadcast %cst_142 : f32 to vector<4x32xf32>
    %321 = arith.cmpf ogt, %263, %320 : vector<4x32xf32>
    %cst_143 = arith.constant 7.500000e-01 : f32
    %322 = vector.broadcast %cst_143 : f32 to vector<4x32xf32>
    %323 = arith.mulf %259, %322 : vector<4x32xf32>
    %cst_144 = arith.constant 0.000000e+00 : f32
    %324 = vector.broadcast %cst_144 : f32 to vector<4x32xf32>
    %325 = arith.select %321, %324, %323 : vector<4x32xi1>, vector<4x32xf32>
    %326 = arith.addf %325, %319 : vector<4x32xf32>
    %cst_145 = arith.constant 5.000000e-01 : f32
    %327 = vector.broadcast %cst_145 : f32 to vector<4x32xf32>
    %328 = arith.cmpf ogt, %326, %327 : vector<4x32xf32>
    %329 = arith.extui %328 : vector<4x32xi1> to vector<4x32xi32>
    %330 = arith.sitofp %329 : vector<4x32xi32> to vector<4x32xf32>
    %cst_146 = arith.constant dense<0.000000e+00> : vector<4x32xf32>
    %331 = tpu.matmul %330, %2, %cst_146 {dimension_numbers = #tpu.dot_dimension_numbers<[1], [0], [0], [1], [0, 0, 1, 1], [], []>} : vector<4x32xf32>, vector<32x32xf32>, vector<4x32xf32> -> vector<4x32xf32>
    %332 = arith.addf %331, %12 : vector<4x32xf32>
    %cst_147 = arith.constant 5.000000e-01 : f32
    %333 = vector.broadcast %cst_147 : f32 to vector<4x32xf32>
    %334 = arith.mulf %268, %333 : vector<4x32xf32>
    %335 = arith.addf %334, %332 : vector<4x32xf32>
    %cst_148 = arith.constant 0.000000e+00 : f32
    %336 = vector.broadcast %cst_148 : f32 to vector<4x32xf32>
    %337 = arith.cmpf ogt, %279, %336 : vector<4x32xf32>
    %cst_149 = arith.constant 7.500000e-01 : f32
    %338 = vector.broadcast %cst_149 : f32 to vector<4x32xf32>
    %339 = arith.mulf %275, %338 : vector<4x32xf32>
    %cst_150 = arith.constant 0.000000e+00 : f32
    %340 = vector.broadcast %cst_150 : f32 to vector<4x32xf32>
    %341 = arith.select %337, %340, %339 : vector<4x32xi1>, vector<4x32xf32>
    %342 = arith.addf %341, %335 : vector<4x32xf32>
    %cst_151 = arith.constant 5.000000e-01 : f32
    %343 = vector.broadcast %cst_151 : f32 to vector<4x32xf32>
    %344 = arith.cmpf ogt, %342, %343 : vector<4x32xf32>
    %345 = arith.extui %344 : vector<4x32xi1> to vector<4x32xi32>
    %346 = arith.sitofp %345 : vector<4x32xi32> to vector<4x32xf32>
    %cst_152 = arith.constant dense<0.000000e+00> : vector<4x4xf32>
    %347 = tpu.matmul %346, %3, %cst_152 {dimension_numbers = #tpu.dot_dimension_numbers<[1], [0], [0], [1], [0, 0, 1, 1], [], []>} : vector<4x32xf32>, vector<32x4xf32>, vector<4x4xf32> -> vector<4x4xf32>
    %348 = arith.addf %347, %15 : vector<4x4xf32>
    %cst_153 = arith.constant 5.000000e-01 : f32
    %349 = vector.broadcast %cst_153 : f32 to vector<4x4xf32>
    %350 = arith.mulf %284, %349 : vector<4x4xf32>
    %351 = arith.addf %350, %348 : vector<4x4xf32>
    %cst_154 = arith.constant 0.000000e+00 : f32
    %352 = vector.broadcast %cst_154 : f32 to vector<4x4xf32>
    %353 = arith.cmpf ogt, %295, %352 : vector<4x4xf32>
    %cst_155 = arith.constant 7.500000e-01 : f32
    %354 = vector.broadcast %cst_155 : f32 to vector<4x4xf32>
    %355 = arith.mulf %291, %354 : vector<4x4xf32>
    %cst_156 = arith.constant 0.000000e+00 : f32
    %356 = vector.broadcast %cst_156 : f32 to vector<4x4xf32>
    %357 = arith.select %353, %356, %355 : vector<4x4xi1>, vector<4x4xf32>
    %358 = arith.addf %357, %351 : vector<4x4xf32>
    %cst_157 = arith.constant 5.000000e-01 : f32
    %359 = vector.broadcast %cst_157 : f32 to vector<4x4xf32>
    %360 = arith.cmpf ogt, %358, %359 : vector<4x4xf32>
    %361 = arith.extui %360 : vector<4x4xi1> to vector<4x4xi32>
    %362 = arith.sitofp %361 : vector<4x4xi32> to vector<4x4xf32>
    %363 = arith.addf %296, %362 : vector<4x4xf32>
    %c5 = arith.constant 5 : index
    %c0_158 = arith.constant 0 : index
    %c0_159 = arith.constant 0 : index
    %364 = vector.load %arg0[%c5, %c0_158, %c0_159] : memref<8x4x8xf32, #tpu.memory_space<vmem>>, vector<1x4x8xf32>
    %365 = vector.shape_cast %364 : vector<1x4x8xf32> to vector<4x8xf32>
    %cst_160 = arith.constant dense<0.000000e+00> : vector<4x32xf32>
    %366 = tpu.matmul %365, %0, %cst_160 {dimension_numbers = #tpu.dot_dimension_numbers<[1], [0], [0], [1], [0, 0, 1, 1], [], []>} : vector<4x8xf32>, vector<8x32xf32>, vector<4x32xf32> -> vector<4x32xf32>
    %367 = arith.addf %366, %6 : vector<4x32xf32>
    %cst_161 = arith.constant 5.000000e-01 : f32
    %368 = vector.broadcast %cst_161 : f32 to vector<4x32xf32>
    %369 = arith.mulf %303, %368 : vector<4x32xf32>
    %370 = arith.addf %369, %367 : vector<4x32xf32>
    %cst_162 = arith.constant 0.000000e+00 : f32
    %371 = vector.broadcast %cst_162 : f32 to vector<4x32xf32>
    %372 = arith.cmpf ogt, %314, %371 : vector<4x32xf32>
    %cst_163 = arith.constant 7.500000e-01 : f32
    %373 = vector.broadcast %cst_163 : f32 to vector<4x32xf32>
    %374 = arith.mulf %310, %373 : vector<4x32xf32>
    %cst_164 = arith.constant 0.000000e+00 : f32
    %375 = vector.broadcast %cst_164 : f32 to vector<4x32xf32>
    %376 = arith.select %372, %375, %374 : vector<4x32xi1>, vector<4x32xf32>
    %377 = arith.addf %376, %370 : vector<4x32xf32>
    %cst_165 = arith.constant 5.000000e-01 : f32
    %378 = vector.broadcast %cst_165 : f32 to vector<4x32xf32>
    %379 = arith.cmpf ogt, %377, %378 : vector<4x32xf32>
    %380 = arith.extui %379 : vector<4x32xi1> to vector<4x32xi32>
    %381 = arith.sitofp %380 : vector<4x32xi32> to vector<4x32xf32>
    %cst_166 = arith.constant dense<0.000000e+00> : vector<4x32xf32>
    %382 = tpu.matmul %381, %1, %cst_166 {dimension_numbers = #tpu.dot_dimension_numbers<[1], [0], [0], [1], [0, 0, 1, 1], [], []>} : vector<4x32xf32>, vector<32x32xf32>, vector<4x32xf32> -> vector<4x32xf32>
    %383 = arith.addf %382, %9 : vector<4x32xf32>
    %cst_167 = arith.constant 5.000000e-01 : f32
    %384 = vector.broadcast %cst_167 : f32 to vector<4x32xf32>
    %385 = arith.mulf %319, %384 : vector<4x32xf32>
    %386 = arith.addf %385, %383 : vector<4x32xf32>
    %cst_168 = arith.constant 0.000000e+00 : f32
    %387 = vector.broadcast %cst_168 : f32 to vector<4x32xf32>
    %388 = arith.cmpf ogt, %330, %387 : vector<4x32xf32>
    %cst_169 = arith.constant 7.500000e-01 : f32
    %389 = vector.broadcast %cst_169 : f32 to vector<4x32xf32>
    %390 = arith.mulf %326, %389 : vector<4x32xf32>
    %cst_170 = arith.constant 0.000000e+00 : f32
    %391 = vector.broadcast %cst_170 : f32 to vector<4x32xf32>
    %392 = arith.select %388, %391, %390 : vector<4x32xi1>, vector<4x32xf32>
    %393 = arith.addf %392, %386 : vector<4x32xf32>
    %cst_171 = arith.constant 5.000000e-01 : f32
    %394 = vector.broadcast %cst_171 : f32 to vector<4x32xf32>
    %395 = arith.cmpf ogt, %393, %394 : vector<4x32xf32>
    %396 = arith.extui %395 : vector<4x32xi1> to vector<4x32xi32>
    %397 = arith.sitofp %396 : vector<4x32xi32> to vector<4x32xf32>
    %cst_172 = arith.constant dense<0.000000e+00> : vector<4x32xf32>
    %398 = tpu.matmul %397, %2, %cst_172 {dimension_numbers = #tpu.dot_dimension_numbers<[1], [0], [0], [1], [0, 0, 1, 1], [], []>} : vector<4x32xf32>, vector<32x32xf32>, vector<4x32xf32> -> vector<4x32xf32>
    %399 = arith.addf %398, %12 : vector<4x32xf32>
    %cst_173 = arith.constant 5.000000e-01 : f32
    %400 = vector.broadcast %cst_173 : f32 to vector<4x32xf32>
    %401 = arith.mulf %335, %400 : vector<4x32xf32>
    %402 = arith.addf %401, %399 : vector<4x32xf32>
    %cst_174 = arith.constant 0.000000e+00 : f32
    %403 = vector.broadcast %cst_174 : f32 to vector<4x32xf32>
    %404 = arith.cmpf ogt, %346, %403 : vector<4x32xf32>
    %cst_175 = arith.constant 7.500000e-01 : f32
    %405 = vector.broadcast %cst_175 : f32 to vector<4x32xf32>
    %406 = arith.mulf %342, %405 : vector<4x32xf32>
    %cst_176 = arith.constant 0.000000e+00 : f32
    %407 = vector.broadcast %cst_176 : f32 to vector<4x32xf32>
    %408 = arith.select %404, %407, %406 : vector<4x32xi1>, vector<4x32xf32>
    %409 = arith.addf %408, %402 : vector<4x32xf32>
    %cst_177 = arith.constant 5.000000e-01 : f32
    %410 = vector.broadcast %cst_177 : f32 to vector<4x32xf32>
    %411 = arith.cmpf ogt, %409, %410 : vector<4x32xf32>
    %412 = arith.extui %411 : vector<4x32xi1> to vector<4x32xi32>
    %413 = arith.sitofp %412 : vector<4x32xi32> to vector<4x32xf32>
    %cst_178 = arith.constant dense<0.000000e+00> : vector<4x4xf32>
    %414 = tpu.matmul %413, %3, %cst_178 {dimension_numbers = #tpu.dot_dimension_numbers<[1], [0], [0], [1], [0, 0, 1, 1], [], []>} : vector<4x32xf32>, vector<32x4xf32>, vector<4x4xf32> -> vector<4x4xf32>
    %415 = arith.addf %414, %15 : vector<4x4xf32>
    %cst_179 = arith.constant 5.000000e-01 : f32
    %416 = vector.broadcast %cst_179 : f32 to vector<4x4xf32>
    %417 = arith.mulf %351, %416 : vector<4x4xf32>
    %418 = arith.addf %417, %415 : vector<4x4xf32>
    %cst_180 = arith.constant 0.000000e+00 : f32
    %419 = vector.broadcast %cst_180 : f32 to vector<4x4xf32>
    %420 = arith.cmpf ogt, %362, %419 : vector<4x4xf32>
    %cst_181 = arith.constant 7.500000e-01 : f32
    %421 = vector.broadcast %cst_181 : f32 to vector<4x4xf32>
    %422 = arith.mulf %358, %421 : vector<4x4xf32>
    %cst_182 = arith.constant 0.000000e+00 : f32
    %423 = vector.broadcast %cst_182 : f32 to vector<4x4xf32>
    %424 = arith.select %420, %423, %422 : vector<4x4xi1>, vector<4x4xf32>
    %425 = arith.addf %424, %418 : vector<4x4xf32>
    %cst_183 = arith.constant 5.000000e-01 : f32
    %426 = vector.broadcast %cst_183 : f32 to vector<4x4xf32>
    %427 = arith.cmpf ogt, %425, %426 : vector<4x4xf32>
    %428 = arith.extui %427 : vector<4x4xi1> to vector<4x4xi32>
    %429 = arith.sitofp %428 : vector<4x4xi32> to vector<4x4xf32>
    %430 = arith.addf %363, %429 : vector<4x4xf32>
    %c6 = arith.constant 6 : index
    %c0_184 = arith.constant 0 : index
    %c0_185 = arith.constant 0 : index
    %431 = vector.load %arg0[%c6, %c0_184, %c0_185] : memref<8x4x8xf32, #tpu.memory_space<vmem>>, vector<1x4x8xf32>
    %432 = vector.shape_cast %431 : vector<1x4x8xf32> to vector<4x8xf32>
    %cst_186 = arith.constant dense<0.000000e+00> : vector<4x32xf32>
    %433 = tpu.matmul %432, %0, %cst_186 {dimension_numbers = #tpu.dot_dimension_numbers<[1], [0], [0], [1], [0, 0, 1, 1], [], []>} : vector<4x8xf32>, vector<8x32xf32>, vector<4x32xf32> -> vector<4x32xf32>
    %434 = arith.addf %433, %6 : vector<4x32xf32>
    %cst_187 = arith.constant 5.000000e-01 : f32
    %435 = vector.broadcast %cst_187 : f32 to vector<4x32xf32>
    %436 = arith.mulf %370, %435 : vector<4x32xf32>
    %437 = arith.addf %436, %434 : vector<4x32xf32>
    %cst_188 = arith.constant 0.000000e+00 : f32
    %438 = vector.broadcast %cst_188 : f32 to vector<4x32xf32>
    %439 = arith.cmpf ogt, %381, %438 : vector<4x32xf32>
    %cst_189 = arith.constant 7.500000e-01 : f32
    %440 = vector.broadcast %cst_189 : f32 to vector<4x32xf32>
    %441 = arith.mulf %377, %440 : vector<4x32xf32>
    %cst_190 = arith.constant 0.000000e+00 : f32
    %442 = vector.broadcast %cst_190 : f32 to vector<4x32xf32>
    %443 = arith.select %439, %442, %441 : vector<4x32xi1>, vector<4x32xf32>
    %444 = arith.addf %443, %437 : vector<4x32xf32>
    %cst_191 = arith.constant 5.000000e-01 : f32
    %445 = vector.broadcast %cst_191 : f32 to vector<4x32xf32>
    %446 = arith.cmpf ogt, %444, %445 : vector<4x32xf32>
    %447 = arith.extui %446 : vector<4x32xi1> to vector<4x32xi32>
    %448 = arith.sitofp %447 : vector<4x32xi32> to vector<4x32xf32>
    %cst_192 = arith.constant dense<0.000000e+00> : vector<4x32xf32>
    %449 = tpu.matmul %448, %1, %cst_192 {dimension_numbers = #tpu.dot_dimension_numbers<[1], [0], [0], [1], [0, 0, 1, 1], [], []>} : vector<4x32xf32>, vector<32x32xf32>, vector<4x32xf32> -> vector<4x32xf32>
    %450 = arith.addf %449, %9 : vector<4x32xf32>
    %cst_193 = arith.constant 5.000000e-01 : f32
    %451 = vector.broadcast %cst_193 : f32 to vector<4x32xf32>
    %452 = arith.mulf %386, %451 : vector<4x32xf32>
    %453 = arith.addf %452, %450 : vector<4x32xf32>
    %cst_194 = arith.constant 0.000000e+00 : f32
    %454 = vector.broadcast %cst_194 : f32 to vector<4x32xf32>
    %455 = arith.cmpf ogt, %397, %454 : vector<4x32xf32>
    %cst_195 = arith.constant 7.500000e-01 : f32
    %456 = vector.broadcast %cst_195 : f32 to vector<4x32xf32>
    %457 = arith.mulf %393, %456 : vector<4x32xf32>
    %cst_196 = arith.constant 0.000000e+00 : f32
    %458 = vector.broadcast %cst_196 : f32 to vector<4x32xf32>
    %459 = arith.select %455, %458, %457 : vector<4x32xi1>, vector<4x32xf32>
    %460 = arith.addf %459, %453 : vector<4x32xf32>
    %cst_197 = arith.constant 5.000000e-01 : f32
    %461 = vector.broadcast %cst_197 : f32 to vector<4x32xf32>
    %462 = arith.cmpf ogt, %460, %461 : vector<4x32xf32>
    %463 = arith.extui %462 : vector<4x32xi1> to vector<4x32xi32>
    %464 = arith.sitofp %463 : vector<4x32xi32> to vector<4x32xf32>
    %cst_198 = arith.constant dense<0.000000e+00> : vector<4x32xf32>
    %465 = tpu.matmul %464, %2, %cst_198 {dimension_numbers = #tpu.dot_dimension_numbers<[1], [0], [0], [1], [0, 0, 1, 1], [], []>} : vector<4x32xf32>, vector<32x32xf32>, vector<4x32xf32> -> vector<4x32xf32>
    %466 = arith.addf %465, %12 : vector<4x32xf32>
    %cst_199 = arith.constant 5.000000e-01 : f32
    %467 = vector.broadcast %cst_199 : f32 to vector<4x32xf32>
    %468 = arith.mulf %402, %467 : vector<4x32xf32>
    %469 = arith.addf %468, %466 : vector<4x32xf32>
    %cst_200 = arith.constant 0.000000e+00 : f32
    %470 = vector.broadcast %cst_200 : f32 to vector<4x32xf32>
    %471 = arith.cmpf ogt, %413, %470 : vector<4x32xf32>
    %cst_201 = arith.constant 7.500000e-01 : f32
    %472 = vector.broadcast %cst_201 : f32 to vector<4x32xf32>
    %473 = arith.mulf %409, %472 : vector<4x32xf32>
    %cst_202 = arith.constant 0.000000e+00 : f32
    %474 = vector.broadcast %cst_202 : f32 to vector<4x32xf32>
    %475 = arith.select %471, %474, %473 : vector<4x32xi1>, vector<4x32xf32>
    %476 = arith.addf %475, %469 : vector<4x32xf32>
    %cst_203 = arith.constant 5.000000e-01 : f32
    %477 = vector.broadcast %cst_203 : f32 to vector<4x32xf32>
    %478 = arith.cmpf ogt, %476, %477 : vector<4x32xf32>
    %479 = arith.extui %478 : vector<4x32xi1> to vector<4x32xi32>
    %480 = arith.sitofp %479 : vector<4x32xi32> to vector<4x32xf32>
    %cst_204 = arith.constant dense<0.000000e+00> : vector<4x4xf32>
    %481 = tpu.matmul %480, %3, %cst_204 {dimension_numbers = #tpu.dot_dimension_numbers<[1], [0], [0], [1], [0, 0, 1, 1], [], []>} : vector<4x32xf32>, vector<32x4xf32>, vector<4x4xf32> -> vector<4x4xf32>
    %482 = arith.addf %481, %15 : vector<4x4xf32>
    %cst_205 = arith.constant 5.000000e-01 : f32
    %483 = vector.broadcast %cst_205 : f32 to vector<4x4xf32>
    %484 = arith.mulf %418, %483 : vector<4x4xf32>
    %485 = arith.addf %484, %482 : vector<4x4xf32>
    %cst_206 = arith.constant 0.000000e+00 : f32
    %486 = vector.broadcast %cst_206 : f32 to vector<4x4xf32>
    %487 = arith.cmpf ogt, %429, %486 : vector<4x4xf32>
    %cst_207 = arith.constant 7.500000e-01 : f32
    %488 = vector.broadcast %cst_207 : f32 to vector<4x4xf32>
    %489 = arith.mulf %425, %488 : vector<4x4xf32>
    %cst_208 = arith.constant 0.000000e+00 : f32
    %490 = vector.broadcast %cst_208 : f32 to vector<4x4xf32>
    %491 = arith.select %487, %490, %489 : vector<4x4xi1>, vector<4x4xf32>
    %492 = arith.addf %491, %485 : vector<4x4xf32>
    %cst_209 = arith.constant 5.000000e-01 : f32
    %493 = vector.broadcast %cst_209 : f32 to vector<4x4xf32>
    %494 = arith.cmpf ogt, %492, %493 : vector<4x4xf32>
    %495 = arith.extui %494 : vector<4x4xi1> to vector<4x4xi32>
    %496 = arith.sitofp %495 : vector<4x4xi32> to vector<4x4xf32>
    %497 = arith.addf %430, %496 : vector<4x4xf32>
    %c7 = arith.constant 7 : index
    %c0_210 = arith.constant 0 : index
    %c0_211 = arith.constant 0 : index
    %498 = vector.load %arg0[%c7, %c0_210, %c0_211] : memref<8x4x8xf32, #tpu.memory_space<vmem>>, vector<1x4x8xf32>
    %499 = vector.shape_cast %498 : vector<1x4x8xf32> to vector<4x8xf32>
    %cst_212 = arith.constant dense<0.000000e+00> : vector<4x32xf32>
    %500 = tpu.matmul %499, %0, %cst_212 {dimension_numbers = #tpu.dot_dimension_numbers<[1], [0], [0], [1], [0, 0, 1, 1], [], []>} : vector<4x8xf32>, vector<8x32xf32>, vector<4x32xf32> -> vector<4x32xf32>
    %501 = arith.addf %500, %6 : vector<4x32xf32>
    %cst_213 = arith.constant 5.000000e-01 : f32
    %502 = vector.broadcast %cst_213 : f32 to vector<4x32xf32>
    %503 = arith.mulf %437, %502 : vector<4x32xf32>
    %504 = arith.addf %503, %501 : vector<4x32xf32>
    %cst_214 = arith.constant 0.000000e+00 : f32
    %505 = vector.broadcast %cst_214 : f32 to vector<4x32xf32>
    %506 = arith.cmpf ogt, %448, %505 : vector<4x32xf32>
    %cst_215 = arith.constant 7.500000e-01 : f32
    %507 = vector.broadcast %cst_215 : f32 to vector<4x32xf32>
    %508 = arith.mulf %444, %507 : vector<4x32xf32>
    %cst_216 = arith.constant 0.000000e+00 : f32
    %509 = vector.broadcast %cst_216 : f32 to vector<4x32xf32>
    %510 = arith.select %506, %509, %508 : vector<4x32xi1>, vector<4x32xf32>
    %511 = arith.addf %510, %504 : vector<4x32xf32>
    %cst_217 = arith.constant 5.000000e-01 : f32
    %512 = vector.broadcast %cst_217 : f32 to vector<4x32xf32>
    %513 = arith.cmpf ogt, %511, %512 : vector<4x32xf32>
    %514 = arith.extui %513 : vector<4x32xi1> to vector<4x32xi32>
    %515 = arith.sitofp %514 : vector<4x32xi32> to vector<4x32xf32>
    %cst_218 = arith.constant dense<0.000000e+00> : vector<4x32xf32>
    %516 = tpu.matmul %515, %1, %cst_218 {dimension_numbers = #tpu.dot_dimension_numbers<[1], [0], [0], [1], [0, 0, 1, 1], [], []>} : vector<4x32xf32>, vector<32x32xf32>, vector<4x32xf32> -> vector<4x32xf32>
    %517 = arith.addf %516, %9 : vector<4x32xf32>
    %cst_219 = arith.constant 5.000000e-01 : f32
    %518 = vector.broadcast %cst_219 : f32 to vector<4x32xf32>
    %519 = arith.mulf %453, %518 : vector<4x32xf32>
    %520 = arith.addf %519, %517 : vector<4x32xf32>
    %cst_220 = arith.constant 0.000000e+00 : f32
    %521 = vector.broadcast %cst_220 : f32 to vector<4x32xf32>
    %522 = arith.cmpf ogt, %464, %521 : vector<4x32xf32>
    %cst_221 = arith.constant 7.500000e-01 : f32
    %523 = vector.broadcast %cst_221 : f32 to vector<4x32xf32>
    %524 = arith.mulf %460, %523 : vector<4x32xf32>
    %cst_222 = arith.constant 0.000000e+00 : f32
    %525 = vector.broadcast %cst_222 : f32 to vector<4x32xf32>
    %526 = arith.select %522, %525, %524 : vector<4x32xi1>, vector<4x32xf32>
    %527 = arith.addf %526, %520 : vector<4x32xf32>
    %cst_223 = arith.constant 5.000000e-01 : f32
    %528 = vector.broadcast %cst_223 : f32 to vector<4x32xf32>
    %529 = arith.cmpf ogt, %527, %528 : vector<4x32xf32>
    %530 = arith.extui %529 : vector<4x32xi1> to vector<4x32xi32>
    %531 = arith.sitofp %530 : vector<4x32xi32> to vector<4x32xf32>
    %cst_224 = arith.constant dense<0.000000e+00> : vector<4x32xf32>
    %532 = tpu.matmul %531, %2, %cst_224 {dimension_numbers = #tpu.dot_dimension_numbers<[1], [0], [0], [1], [0, 0, 1, 1], [], []>} : vector<4x32xf32>, vector<32x32xf32>, vector<4x32xf32> -> vector<4x32xf32>
    %533 = arith.addf %532, %12 : vector<4x32xf32>
    %cst_225 = arith.constant 5.000000e-01 : f32
    %534 = vector.broadcast %cst_225 : f32 to vector<4x32xf32>
    %535 = arith.mulf %469, %534 : vector<4x32xf32>
    %536 = arith.addf %535, %533 : vector<4x32xf32>
    %cst_226 = arith.constant 0.000000e+00 : f32
    %537 = vector.broadcast %cst_226 : f32 to vector<4x32xf32>
    %538 = arith.cmpf ogt, %480, %537 : vector<4x32xf32>
    %cst_227 = arith.constant 7.500000e-01 : f32
    %539 = vector.broadcast %cst_227 : f32 to vector<4x32xf32>
    %540 = arith.mulf %476, %539 : vector<4x32xf32>
    %cst_228 = arith.constant 0.000000e+00 : f32
    %541 = vector.broadcast %cst_228 : f32 to vector<4x32xf32>
    %542 = arith.select %538, %541, %540 : vector<4x32xi1>, vector<4x32xf32>
    %543 = arith.addf %542, %536 : vector<4x32xf32>
    %cst_229 = arith.constant 5.000000e-01 : f32
    %544 = vector.broadcast %cst_229 : f32 to vector<4x32xf32>
    %545 = arith.cmpf ogt, %543, %544 : vector<4x32xf32>
    %546 = arith.extui %545 : vector<4x32xi1> to vector<4x32xi32>
    %547 = arith.sitofp %546 : vector<4x32xi32> to vector<4x32xf32>
    %cst_230 = arith.constant dense<0.000000e+00> : vector<4x4xf32>
    %548 = tpu.matmul %547, %3, %cst_230 {dimension_numbers = #tpu.dot_dimension_numbers<[1], [0], [0], [1], [0, 0, 1, 1], [], []>} : vector<4x32xf32>, vector<32x4xf32>, vector<4x4xf32> -> vector<4x4xf32>
    %549 = arith.addf %548, %15 : vector<4x4xf32>
    %cst_231 = arith.constant 5.000000e-01 : f32
    %550 = vector.broadcast %cst_231 : f32 to vector<4x4xf32>
    %551 = arith.mulf %485, %550 : vector<4x4xf32>
    %552 = arith.addf %551, %549 : vector<4x4xf32>
    %cst_232 = arith.constant 0.000000e+00 : f32
    %553 = vector.broadcast %cst_232 : f32 to vector<4x4xf32>
    %554 = arith.cmpf ogt, %496, %553 : vector<4x4xf32>
    %cst_233 = arith.constant 7.500000e-01 : f32
    %555 = vector.broadcast %cst_233 : f32 to vector<4x4xf32>
    %556 = arith.mulf %492, %555 : vector<4x4xf32>
    %cst_234 = arith.constant 0.000000e+00 : f32
    %557 = vector.broadcast %cst_234 : f32 to vector<4x4xf32>
    %558 = arith.select %554, %557, %556 : vector<4x4xi1>, vector<4x4xf32>
    %559 = arith.addf %558, %552 : vector<4x4xf32>
    %cst_235 = arith.constant 5.000000e-01 : f32
    %560 = vector.broadcast %cst_235 : f32 to vector<4x4xf32>
    %561 = arith.cmpf ogt, %559, %560 : vector<4x4xf32>
    %562 = arith.extui %561 : vector<4x4xi1> to vector<4x4xi32>
    %563 = arith.sitofp %562 : vector<4x4xi32> to vector<4x4xf32>
    %564 = arith.addf %497, %563 : vector<4x4xf32>
    %cst_236 = arith.constant 8.000000e+00 : f32
    %565 = vector.broadcast %cst_236 : f32 to vector<4x4xf32>
    %566 = arith.divf %564, %565 : vector<4x4xf32>
    %c0_237 = arith.constant 0 : index
    %c0_238 = arith.constant 0 : index
    %567 = vector.load %arg9[%c0_237, %c0_238] : memref<4x4xf32, #tpu.memory_space<vmem>>, vector<4x4xf32>
    tpu.vector_store %arg9[%c0_237, %c0_238], %566 {strides = array<i32>} : memref<4x4xf32, #tpu.memory_space<vmem>>, vector<4x4xf32>,
    return
  }
}

</mosaic_0001>

<bundles_post_ra>
// kernel: actor_net_spiking_forward.1
= control target key start
LH: loop header
LB: loop body
LE: loop exit
PB: predicated region body
PF: predicated region fallthrough
CT: control target
= control target key end

     0   :  { %vm75_vm0 = vcmask 64512   ;;  %v3412_v2 = vmov 0.0   ;;  %vm3413_vm1 = vmmov 0   ;;  %v3414_v6 = vmov 0.0|0.0   ;;  %s3938_s0 = inlined_call_operand.vmem [shape: f32[8,4,8], index: 0, kind: input, shape index: {}]   ;;  %s3939_s1 = inlined_call_operand.vmem [shape: f32[8,32], index: 1, kind: input, shape index: {}]   ;;  %s3940_s2 = inlined_call_operand.vmem [shape: f32[1,32], index: 2, kind: input, shape index: {}]   ;;  %s3941_s3 = inlined_call_operand.vmem [shape: f32[32,32], index: 3, kind: input, shape index: {}]   ;;  %s3942_s4 = inlined_call_operand.vmem [shape: f32[1,32], index: 4, kind: input, shape index: {}]   ;;  %s3943_s5 = inlined_call_operand.vmem [shape: f32[32,32], index: 5, kind: input, shape index: {}]   ;;  %s3944_s6 = inlined_call_operand.vmem [shape: f32[1,32], index: 6, kind: input, shape index: {}]   ;;  %s3945_s7 = inlined_call_operand.vmem [shape: f32[32,4], index: 7, kind: input, shape index: {}]   ;;  %s3946_s8 = inlined_call_operand.vmem [shape: f32[1,4], index: 8, kind: input, shape index: {}]   ;;  %s3947_s9 = inlined_call_operand.hbm [shape: f32[4,4], index: 9, kind: output, shape index: {}]  }
   0x1   :  { %v3469_v0 = vld [vmem:[%s3939_s1] sm:$0xff]  ;;  %2936 = vmatprep.subr.mxu1 %v3412_v2  ;;  %2938 = vmatprep.mubr.msk.f32.mxu1 %vm3413_vm1, %v3412_v2  ;;  %v35_v4 = vld [vmem:[%s3941_s3 + $0x8] sm:$0xff] }
   0x2   :  { %v74_v1 = vld [vmem:[%s3938_s0] sm:$0xf]  ;;  %2937 = vmatpush3.msra.mxu1 %v3469_v0  ;;  %3246 = vmatprep.subr.bf16.mxu0 %v3414_v6 }
   0x3   :  { %v34_v3 = vld [vmem:[%s3941_s3] sm:$0xff] }
   0x4   :  { %v3484_v5 = vpack.c.bf16 %v35_v4, %v34_v3 }
   0x5   :  { %14 = vsyncpa [#allocation3], 0  ;;  %2939 = vmatmul.mubr.msk.f32.vlgmr.msra.gmra.mrb[0].mxu1 %vm75_vm0, %v74_v1  ;;  %3240 = vmatprep.subr.bf16.mxu1 %v3414_v6  ;;  %v36_v7 = vld [vmem:[%s3941_s3 + $0x10] sm:$0xff]  ;;  %v37_v8 = vld [vmem:[%s3941_s3 + $0x18] sm:$0xff]  ;;  %vm154_vm2 = vcmask 261120  }
   0x6   :  { %3242 = vmatpush3.bf16.msra.mxu1 %v3484_v5  ;;  %2949 = vmatprep.mubr.msk.f32.mxu1 %vm3413_vm1, %v3412_v2  ;;  %v3501_v9 = vpack.c.bf16 %v37_v8, %v36_v7  ;;  %v38_v10 = vld [vmem:[%s3943_s5] sm:$0xff]  ;;  %v39_v11 = vld [vmem:[%s3943_s5 + $0x8] sm:$0xff]  ;;  %v40_v20 = vld [vmem:[%s3943_s5 + $0x10] sm:$0xff] }
   0x7   :  { %3243 = vmatprep.subr.bf16.mxu1 %v3414_v6  ;;  %2960 = vmatprep.mubr.msk.f32.mxu0 %vm3413_vm1, %v3412_v2  ;;  %v3511_v12 = vpack.c.bf16 %v39_v11, %v38_v10  ;;  %v3518_v13 = vld [vmem:[%s3940_s2] ss:$0 sm:$0xff]  ;;  %v41_v21 = vld [vmem:[%s3943_s5 + $0x18] sm:$0xff]  ;;  %v43_v24 = vld [vmem:[%s3945_s7 + $0x8] sm:$0xff] }
   0x8   :  { %v3531_v22 = vpack.c.bf16 %v41_v21, %v40_v20  ;;  %v42_v23 = vld [vmem:[%s3945_s7] sm:$0xff]  ;;  %v44_v34 = vld [vmem:[%s3945_s7 + $0x10] sm:$0xff]  ;;  %v45_v35 = vld [vmem:[%s3945_s7 + $0x18] sm:$0xff] }
   0x9   :  { %3248 = vmatpush3.bf16.msra.mxu0 %v3511_v12  ;;  %v3541_v25 = vpack.c.bf16 %v43_v24, %v42_v23  ;;  %v3548_v26 = vld [vmem:[%s3942_s4] ss:$0 sm:$0xff]  ;;  %v2737_v32 = vld [vmem:[%s3938_s0 + $0x4] sm:$0xf]  ;;  %v3573_v36 = vpack.c.bf16 %v45_v35, %v44_v34  ;;  %v2746_v63 = vld [vmem:[%s3938_s0 + $0x8] sm:$0xf] }
   0xa   :  { %3245 = vmatpush3.bf16.msra.mxu1 %v3501_v9  ;;  %3249 = vmatprep.subr.bf16.mxu0 %v3414_v6  ;;  %v3580_v37 = vld [vmem:[%s3944_s6] ss:$0 sm:$0xff] }
   0xb   :  { %3252 = vmatprep.subr.bf16.mxu1 %v3414_v6 }
   0xd   :  { %3251 = vmatpush3.bf16.msra.mxu0 %v3531_v22 }
   0xe   :  { %2974 = vmatprep.subr.mxu0 %v3412_v2 }
  0xd8   :  { %v145_v14 = vpop.f32.mrb[0].mxu1 }
  0xd9   :  { %v146_v15 = vadd.f32 %v3518_v13, %v145_v14  ;;  %v2940_v16 = vpop.f32.mrb[1].mxu1 }
  0xdb   :  { %vm151_vm3 = vcmp.gt.f32.partialorder %v146_v15, 0.5  ;;  %v468_v17 = vmul.f32 0.75, %v146_v15  ;;  %v465_v45 = vmul.f32 0.5, %v146_v15 }
  0xdc   :  { %v2730_v18 = vsel %vm151_vm3, 1.0, %v3412_v2 }
  0xdd   :  { %2950 = vmatmul.mubr.msk.f32.vlgmr.msra.gmra.mrb[2].mxu1 %vm154_vm2, %v2730_v18  ;;  %vm467_vm4 = vcmp.gt.f32.partialorder %v2730_v18, 0.0 }
  0xde   :  { %2971 = vmatprep.mubr.msk.f32.mxu1 %vm3413_vm1, %v3412_v2  ;;  %v469_v19 = vsel %vm467_vm4, 0.0, %v468_v17  ;;  %3254 = vmatpush3.bf16.msra.mxu1 %v3541_v25 }
  0xdf   :  { %3255 = vmatprep.subr.bf16.mxu1 %v3414_v6 }
  0xe2   :  { %3257 = vmatpush3.bf16.msra.mxu1 %v3573_v36 }
  0xe3   :  { %3264 = vmatprep.subr.bf16.mxu1 %v3414_v6 }
 0x1b0   :  { %v224_v27 = vpop.f32.mrb[2].mxu1 }
 0x1b1   :  { %v225_v28 = vadd.f32 %v3548_v26, %v224_v27  ;;  %v2951_v29 = vpop.f32.mrb[3].mxu1 }
 0x1b2   :  { %v3647_v29 = vld [vmem:[%s3946_s8] ss:$0 sm:$0xff] }
 0x1b3   :  { %v550_v30 = vmul.f32 0.75, %v225_v28  ;;  %vm230_vm5 = vcmp.gt.f32.partialorder %v225_v28, 0.5  ;;  %v547_v57 = vmul.f32 0.5, %v225_v28 }
 0x1b4   :  { %v2732_v31 = vsel %vm230_vm5, 1.0, %v3412_v2 }
 0x1b5   :  { %2961 = vmatmul.mubr.msk.f32.vlgmr.msra.gmra.mrb[0].mxu0 %vm154_vm2, %v2732_v31  ;;  %vm549_vm6 = vcmp.gt.f32.partialorder %v2732_v31, 0.0 }
 0x1b6   :  { %2975 = vmatpush3.msra.mxu0 %v3469_v0  ;;  %2976 = vmatprep.mubr.msk.f32.mxu0 %vm3413_vm1, %v3412_v2  ;;  %v551_v33 = vsel %vm549_vm6, 0.0, %v550_v30 }
 0x1b7   :  { %3258 = vmatprep.subr.bf16.mxu0 %v3414_v6 }
 0x1b9   :  { %2977 = vmatmul.mubr.msk.f32.vlgmr.msra.gmra.mrb[2].mxu0 %vm75_vm0, %v2737_v32 }
 0x1ba   :  { %3260 = vmatpush3.bf16.msra.mxu0 %v3484_v5  ;;  %2987 = vmatprep.mubr.msk.f32.mxu0 %vm3413_vm1, %v3412_v2 }
 0x1bb   :  { %3261 = vmatprep.subr.bf16.mxu0 %v3414_v6 }
 0x1be   :  { %3263 = vmatpush3.bf16.msra.mxu0 %v3501_v9 }
 0x1bf   :  { %3270 = vmatprep.subr.bf16.mxu0 %v3414_v6 }
 0x288   :  { %v302_v38 = vpop.f32.mrb[0].mxu0 }
 0x289   :  { %v303_v39 = vadd.f32 %v3580_v37, %v302_v38  ;;  %v2962_v40 = vpop.f32.mrb[1].mxu0 }
 0x28b   :  { %vm308_vm7 = vcmp.gt.f32.partialorder %v303_v39, 0.5  ;;  %v632_v41 = vmul.f32 0.75, %v303_v39  ;;  %v629_v7 = vmul.f32 0.5, %v303_v39 }
 0x28c   :  { %v461_v42 = vpop.f32.mrb[2].mxu0  ;;  %v2734_v43 = vsel %vm308_vm7, 1.0, %v3412_v2 }
 0x28d   :  { %v462_v44 = vadd.f32 %v3518_v13, %v461_v42  ;;  %2972 = vmatmul.mubr.msk.f32.vlgmr.msra.gmra.mrb[4].mxu1 %vm154_vm2, %v2734_v43  ;;  %v2978_v46 = vpop.f32.mrb[3].mxu0  ;;  %vm631_vm8 = vcmp.gt.f32.partialorder %v2734_v43, 0.0 }
 0x28e   :  { %3266 = vmatpush3.bf16.msra.mxu1 %v3511_v12  ;;  %2998 = vmatprep.mubr.msk.f32.mxu1 %vm3413_vm1, %v3412_v2  ;;  %v633_v47 = vsel %vm631_vm8, 0.0, %v632_v41 }
 0x28f   :  { %v466_v48 = vadd.f32 %v465_v45, %v462_v44  ;;  %3267 = vmatprep.subr.bf16.mxu1 %v3414_v6 }
 0x291   :  { %v470_v49 = vadd.f32 %v469_v19, %v466_v48  ;;  %v796_v16 = vmul.f32 0.5, %v466_v48 }
 0x292   :  { %3269 = vmatpush3.bf16.msra.mxu1 %v3531_v22 }
 0x293   :  { %vm471_vm9 = vcmp.gt.f32.partialorder %v470_v49, 0.5  ;;  %v799_v50 = vmul.f32 0.75, %v470_v49  ;;  %3012 = vmatprep.subr.mxu1 %v3412_v2 }
 0x294   :  { %v2739_v51 = vsel %vm471_vm9, 1.0, %v3412_v2 }
 0x295   :  { %2988 = vmatmul.mubr.msk.f32.vlgmr.msra.gmra.mrb[4].mxu0 %vm154_vm2, %v2739_v51  ;;  %vm798_vm10 = vcmp.gt.f32.partialorder %v2739_v51, 0.0 }
 0x296   :  { %3272 = vmatpush3.bf16.msra.mxu0 %v3541_v25  ;;  %v800_v52 = vsel %vm798_vm10, 0.0, %v799_v50  ;;  %3009 = vmatprep.mubr.msk.f32.mxu0 %vm3413_vm1, %v3412_v2 }
 0x297   :  { %3273 = vmatprep.subr.bf16.mxu0 %v3414_v6 }
 0x29a   :  { %3275 = vmatpush3.bf16.msra.mxu0 %v3573_v36 }
 0x29b   :  { %3282 = vmatprep.subr.bf16.mxu0 %v3414_v6 }
 0x360   :  { %v380_v53 = vpop.f32.mrb[4].mxu1 }
 0x361   :  { %v2973_v54 = vpop.f32.mrb[5].mxu1  ;;  %v381_v30 = vadd.f32 %v3647_v29, %v380_v53 }
 0x363   :  { %vm386_vm4 = vcmp.gt.f32.partialorder %v381_v30, 0.5  ;;  %v714_v32 = vmul.f32 0.75, %v381_v30  ;;  %v711_v35 = vmul.f32 0.5, %v381_v30 }
 0x364   :  { %v2736_v31 = vsel %vm386_vm4, 1.0, %v3412_v2 }
 0x365   :  { %vm713_vm5 = vcmp.gt.f32.partialorder %v2736_v31, 0.0 }
 0x366   :  { %v715_v40 = vsel %vm713_vm5, 0.0, %v714_v32 }
 0x368   :  { %v543_v55 = vpop.f32.mrb[4].mxu0 }
 0x369   :  { %v544_v56 = vadd.f32 %v3548_v26, %v543_v55  ;;  %v2989_v58 = vpop.f32.mrb[5].mxu0 }
 0x36b   :  { %v3601_v59 = vadd.f32 %v547_v57, %v544_v56 }
 0x36d   :  { %v552_v60 = vadd.f32 %v551_v33, %v3601_v59  ;;  %v878_v44 = vmul.f32 0.5, %v3601_v59 }
 0x36f   :  { %vm553_vm11 = vcmp.gt.f32.partialorder %v552_v60, 0.5  ;;  %v881_v61 = vmul.f32 0.75, %v552_v60 }
 0x370   :  { %v2741_v62 = vsel %vm553_vm11, 1.0, %v3412_v2 }
 0x371   :  { %2999 = vmatmul.mubr.msk.f32.vlgmr.msra.gmra.mrb[6].mxu1 %vm154_vm2, %v2741_v62  ;;  %vm880_vm12 = vcmp.gt.f32.partialorder %v2741_v62, 0.0 }
 0x372   :  { %3013 = vmatpush3.msra.mxu1 %v3469_v0  ;;  %3014 = vmatprep.mubr.msk.f32.mxu1 %vm3413_vm1, %v3412_v2  ;;  %v882_v1 = vsel %vm880_vm12, 0.0, %v881_v61 }
 0x373   :  { %3276 = vmatprep.subr.bf16.mxu1 %v3414_v6 }
 0x375   :  { %3015 = vmatmul.mubr.msk.f32.vlgmr.msra.gmra.mrb[8].mxu1 %vm75_vm0, %v2746_v63 }
 0x376   :  { %3278 = vmatpush3.bf16.msra.mxu1 %v3484_v5  ;;  %3025 = vmatprep.mubr.msk.f32.mxu1 %vm3413_vm1, %v3412_v2 }
 0x377   :  { %3279 = vmatprep.subr.bf16.mxu1 %v3414_v6 }
 0x37a   :  { %3281 = vmatpush3.bf16.msra.mxu1 %v3501_v9 }
 0x37b   :  { %3288 = vmatprep.subr.bf16.mxu1 %v3414_v6 }
 0x444   :  { %v625_v3 = vpop.f32.mrb[6].mxu1 }
 0x445   :  { %v626_v4 = vadd.f32 %v3580_v37, %v625_v3  ;;  %v3000_v8 = vpop.f32.mrb[7].mxu1 }
 0x447   :  { %v3621_v10 = vadd.f32 %v629_v7, %v626_v4 }
 0x448   :  { %v792_v11 = vpop.f32.mrb[8].mxu1 }
 0x449   :  { %v634_v14 = vadd.f32 %v633_v47, %v3621_v10  ;;  %v793_v15 = vadd.f32 %v3518_v13, %v792_v11  ;;  %v3016_v17 = vpop.f32.mrb[9].mxu1  ;;  %v960_v56 = vmul.f32 0.5, %v3621_v10 }
 0x44b   :  { %vm635_vm13 = vcmp.gt.f32.partialorder %v634_v14, 0.5  ;;  %v963_v18 = vmul.f32 0.75, %v634_v14  ;;  %v3625_v19 = vadd.f32 %v796_v16, %v793_v15 }
 0x44c   :  { %v2743_v20 = vsel %vm635_vm13, 1.0, %v3412_v2 }
 0x44d   :  { %v801_v21 = vadd.f32 %v800_v52, %v3625_v19  ;;  %3010 = vmatmul.mubr.msk.f32.vlgmr.msra.gmra.mrb[6].mxu0 %vm154_vm2, %v2743_v20  ;;  %vm962_vm14 = vcmp.gt.f32.partialorder %v2743_v20, 0.0  ;;  %v2755_v52 = vld [vmem:[%s3938_s0 + $0xc] sm:$0xf]  ;;  %v1127_v62 = vmul.f32 0.5, %v3625_v19 }
 0x44e   :  { %3284 = vmatpush3.bf16.msra.mxu0 %v3511_v12  ;;  %3036 = vmatprep.mubr.msk.f32.mxu0 %vm3413_vm1, %v3412_v2  ;;  %v964_v23 = vsel %vm962_vm14, 0.0, %v963_v18 }
 0x44f   :  { %vm802_vm15 = vcmp.gt.f32.partialorder %v801_v21, 0.5  ;;  %v1130_v24 = vmul.f32 0.75, %v801_v21  ;;  %3285 = vmatprep.subr.bf16.mxu0 %v3414_v6 }
 0x450   :  { %v2748_v27 = vsel %vm802_vm15, 1.0, %v3412_v2 }
 0x451   :  { %3026 = vmatmul.mubr.msk.f32.vlgmr.msra.gmra.mrb[10].mxu1 %vm154_vm2, %v2748_v27  ;;  %vm1129_vm3 = vcmp.gt.f32.partialorder %v2748_v27, 0.0 }
 0x452   :  { %3287 = vmatpush3.bf16.msra.mxu0 %v3531_v22  ;;  %3290 = vmatpush3.bf16.msra.mxu1 %v3541_v25  ;;  %v1131_v28 = vsel %vm1129_vm3, 0.0, %v1130_v24 }
 0x453   :  { %3050 = vmatprep.subr.mxu0 %v3412_v2  ;;  %3291 = vmatprep.subr.bf16.mxu1 %v3414_v6 }
 0x454   :  { %3047 = vmatprep.mubr.msk.f32.mxu1 %vm3413_vm1, %v3412_v2 }
 0x456   :  { %3293 = vmatpush3.bf16.msra.mxu1 %v3573_v36 }
 0x457   :  { %3300 = vmatprep.subr.bf16.mxu1 %v3414_v6 }
 0x520   :  { %v707_v33 = vpop.f32.mrb[6].mxu0 }
 0x521   :  { %v708_v34 = vadd.f32 %v3647_v29, %v707_v33  ;;  %v3011_v38 = vpop.f32.mrb[7].mxu0 }
 0x523   :  { %v3652_v39 = vadd.f32 %v711_v35, %v708_v34 }
 0x524   :  { %v874_v41 = vpop.f32.mrb[10].mxu1 }
 0x525   :  { %v716_v42 = vadd.f32 %v715_v40, %v3652_v39  ;;  %v875_v43 = vadd.f32 %v3548_v26, %v874_v41  ;;  %v3027_v45 = vpop.f32.mrb[11].mxu1  ;;  %v1042_v18 = vmul.f32 0.5, %v3652_v39  ;;  %v2764_v39 = vld [vmem:[%s3938_s0 + $0x10] sm:$0xf] }
 0x527   :  { %vm717_vm6 = vcmp.gt.f32.partialorder %v716_v42, 0.5  ;;  %v3657_v46 = vadd.f32 %v878_v44, %v875_v43  ;;  %v1045_v15 = vmul.f32 0.75, %v716_v42 }
 0x528   :  { %v2745_v47 = vsel %vm717_vm6, 1.0, %v3412_v2 }
 0x529   :  { %v883_v48 = vadd.f32 %v882_v1, %v3657_v46  ;;  %v3661_v49 = vadd.f32 %v2745_v47, %v2736_v31  ;;  %vm1044_vm13 = vcmp.gt.f32.partialorder %v2745_v47, 0.0 }
 0x52a   :  { %v1046_v21 = vsel %vm1044_vm13, 0.0, %v1045_v15 }
 0x52b   :  { %vm884_vm7 = vcmp.gt.f32.partialorder %v883_v48, 0.5  ;;  %v1212_v50 = vmul.f32 0.75, %v883_v48 }
 0x52c   :  { %v2750_v51 = vsel %vm884_vm7, 1.0, %v3412_v2 }
 0x52d   :  { %3037 = vmatmul.mubr.msk.f32.vlgmr.msra.gmra.mrb[8].mxu0 %vm154_vm2, %v2750_v51  ;;  %vm1211_vm8 = vcmp.gt.f32.partialorder %v2750_v51, 0.0 }
 0x52e   :  { %3051 = vmatpush3.msra.mxu0 %v3469_v0  ;;  %3052 = vmatprep.mubr.msk.f32.mxu0 %vm3413_vm1, %v3412_v2  ;;  %v1213_v53 = vsel %vm1211_vm8, 0.0, %v1212_v50 }
 0x52f   :  { %3294 = vmatprep.subr.bf16.mxu0 %v3414_v6 }
 0x531   :  { %3053 = vmatmul.mubr.msk.f32.vlgmr.msra.gmra.mrb[10].mxu0 %vm75_vm0, %v2755_v52 }
 0x532   :  { %3296 = vmatpush3.bf16.msra.mxu0 %v3484_v5  ;;  %3063 = vmatprep.mubr.msk.f32.mxu0 %vm3413_vm1, %v3412_v2 }
 0x533   :  { %3297 = vmatprep.subr.bf16.mxu0 %v3414_v6 }
 0x536   :  { %3299 = vmatpush3.bf16.msra.mxu0 %v3501_v9 }
 0x537   :  { %3306 = vmatprep.subr.bf16.mxu0 %v3414_v6 }
 0x600   :  { %v956_v54 = vpop.f32.mrb[8].mxu0 }
 0x601   :  { %v957_v55 = vadd.f32 %v3580_v37, %v956_v54  ;;  %v3038_v57 = vpop.f32.mrb[9].mxu0 }
 0x603   :  { %v3681_v58 = vadd.f32 %v960_v56, %v957_v55 }
 0x604   :  { %v1123_v59 = vpop.f32.mrb[10].mxu0 }
 0x605   :  { %v965_v60 = vadd.f32 %v964_v23, %v3681_v58  ;;  %v1124_v61 = vadd.f32 %v3518_v13, %v1123_v59  ;;  %v3054_v63 = vpop.f32.mrb[11].mxu0  ;;  %v1291_v43 = vmul.f32 0.5, %v3681_v58 }
 0x607   :  { %vm966_vm9 = vcmp.gt.f32.partialorder %v965_v60, 0.5  ;;  %v1294_v1 = vmul.f32 0.75, %v965_v60  ;;  %v3686_v3 = vadd.f32 %v1127_v62, %v1124_v61 }
 0x608   :  { %v2752_v4 = vsel %vm966_vm9, 1.0, %v3412_v2 }
 0x609   :  { %v1132_v7 = vadd.f32 %v1131_v28, %v3686_v3  ;;  %3048 = vmatmul.mubr.msk.f32.vlgmr.msra.gmra.mrb[12].mxu1 %vm154_vm2, %v2752_v4  ;;  %vm1293_vm10 = vcmp.gt.f32.partialorder %v2752_v4, 0.0  ;;  %v1209_v28 = vmul.f32 0.5, %v3657_v46 }
 0x60a   :  { %3302 = vmatpush3.bf16.msra.mxu1 %v3511_v12  ;;  %3074 = vmatprep.mubr.msk.f32.mxu1 %vm3413_vm1, %v3412_v2  ;;  %v1295_v8 = vsel %vm1293_vm10, 0.0, %v1294_v1 }
 0x60b   :  { %vm1133_vm11 = vcmp.gt.f32.partialorder %v1132_v7, 0.5  ;;  %v1461_v10 = vmul.f32 0.75, %v1132_v7  ;;  %3303 = vmatprep.subr.bf16.mxu1 %v3414_v6 }
 0x60c   :  { %v2757_v11 = vsel %vm1133_vm11, 1.0, %v3412_v2 }
 0x60d   :  { %3064 = vmatmul.mubr.msk.f32.vlgmr.msra.gmra.mrb[12].mxu0 %vm154_vm2, %v2757_v11  ;;  %vm1460_vm12 = vcmp.gt.f32.partialorder %v2757_v11, 0.0 }
 0x60e   :  { %3305 = vmatpush3.bf16.msra.mxu1 %v3531_v22  ;;  %3308 = vmatpush3.bf16.msra.mxu0 %v3541_v25  ;;  %v1462_v14 = vsel %vm1460_vm12, 0.0, %v1461_v10 }
 0x60f   :  { %3088 = vmatprep.subr.mxu1 %v3412_v2  ;;  %3309 = vmatprep.subr.bf16.mxu0 %v3414_v6 }
 0x610   :  { %3085 = vmatprep.mubr.msk.f32.mxu0 %vm3413_vm1, %v3412_v2 }
 0x612   :  { %3311 = vmatpush3.bf16.msra.mxu0 %v3573_v36 }
 0x613   :  { %3318 = vmatprep.subr.bf16.mxu0 %v3414_v6 }
 0x6dc   :  { %v1038_v16 = vpop.f32.mrb[12].mxu1 }
 0x6dd   :  { %v1039_v17 = vadd.f32 %v3647_v29, %v1038_v16  ;;  %v3049_v19 = vpop.f32.mrb[13].mxu1 }
 0x6df   :  { %v3707_v20 = vadd.f32 %v1042_v18, %v1039_v17 }
 0x6e0   :  { %v1205_v23 = vpop.f32.mrb[12].mxu0 }
 0x6e1   :  { %v1047_v24 = vadd.f32 %v1046_v21, %v3707_v20  ;;  %v1206_v27 = vadd.f32 %v3548_v26, %v1205_v23  ;;  %v3065_v30 = vpop.f32.mrb[13].mxu0  ;;  %v1373_v62 = vmul.f32 0.5, %v3707_v20  ;;  %v2773_v20 = vld [vmem:[%s3938_s0 + $0x14] sm:$0xf] }
 0x6e3   :  { %vm1048_vm14 = vcmp.gt.f32.partialorder %v1047_v24, 0.5  ;;  %v3712_v31 = vadd.f32 %v1209_v28, %v1206_v27  ;;  %v1376_v59 = vmul.f32 0.75, %v1047_v24 }
 0x6e4   :  { %v2754_v32 = vsel %vm1048_vm14, 1.0, %v3412_v2 }
 0x6e5   :  { %v1214_v33 = vadd.f32 %v1213_v53, %v3712_v31  ;;  %v3717_v34 = vadd.f32 %v2754_v32, %v3661_v49  ;;  %v1458_v49 = vmul.f32 0.5, %v3686_v3  ;;  %vm1375_vm8 = vcmp.gt.f32.partialorder %v2754_v32, 0.0 }
 0x6e6   :  { %v1377_v3 = vsel %vm1375_vm8, 0.0, %v1376_v59  ;;  %v1540_v10 = vmul.f32 0.5, %v3712_v31 }
 0x6e7   :  { %vm1215_vm15 = vcmp.gt.f32.partialorder %v1214_v33, 0.5  ;;  %v1543_v35 = vmul.f32 0.75, %v1214_v33 }
 0x6e8   :  { %v2759_v38 = vsel %vm1215_vm15, 1.0, %v3412_v2 }
 0x6e9   :  { %3075 = vmatmul.mubr.msk.f32.vlgmr.msra.gmra.mrb[14].mxu1 %vm154_vm2, %v2759_v38  ;;  %vm1542_vm3 = vcmp.gt.f32.partialorder %v2759_v38, 0.0 }
 0x6ea   :  { %3089 = vmatpush3.msra.mxu1 %v3469_v0  ;;  %3090 = vmatprep.mubr.msk.f32.mxu1 %vm3413_vm1, %v3412_v2  ;;  %v1544_v40 = vsel %vm1542_vm3, 0.0, %v1543_v35 }
 0x6eb   :  { %3312 = vmatprep.subr.bf16.mxu1 %v3414_v6 }
 0x6ed   :  { %3091 = vmatmul.mubr.msk.f32.vlgmr.msra.gmra.mrb[16].mxu1 %vm75_vm0, %v2764_v39 }
 0x6ee   :  { %3314 = vmatpush3.bf16.msra.mxu1 %v3484_v5  ;;  %3101 = vmatprep.mubr.msk.f32.mxu1 %vm3413_vm1, %v3412_v2 }
 0x6ef   :  { %3315 = vmatprep.subr.bf16.mxu1 %v3414_v6 }
 0x6f2   :  { %3317 = vmatpush3.bf16.msra.mxu1 %v3501_v9 }
 0x6f3   :  { %3324 = vmatprep.subr.bf16.mxu1 %v3414_v6 }
 0x7bc   :  { %v1287_v41 = vpop.f32.mrb[14].mxu1 }
 0x7bd   :  { %v1288_v42 = vadd.f32 %v3580_v37, %v1287_v41  ;;  %v3076_v44 = vpop.f32.mrb[15].mxu1 }
 0x7bf   :  { %v3737_v45 = vadd.f32 %v1291_v43, %v1288_v42 }
 0x7c0   :  { %v1454_v46 = vpop.f32.mrb[16].mxu1 }
 0x7c1   :  { %v1296_v47 = vadd.f32 %v1295_v8, %v3737_v45  ;;  %v1455_v48 = vadd.f32 %v3518_v13, %v1454_v46  ;;  %v3092_v50 = vpop.f32.mrb[17].mxu1  ;;  %v1622_v27 = vmul.f32 0.5, %v3737_v45 }
 0x7c3   :  { %vm1297_vm4 = vcmp.gt.f32.partialorder %v1296_v47, 0.5  ;;  %v1625_v51 = vmul.f32 0.75, %v1296_v47  ;;  %v3742_v52 = vadd.f32 %v1458_v49, %v1455_v48 }
 0x7c4   :  { %v2761_v53 = vsel %vm1297_vm4, 1.0, %v3412_v2 }
 0x7c5   :  { %v1463_v54 = vadd.f32 %v1462_v14, %v3742_v52  ;;  %3086 = vmatmul.mubr.msk.f32.vlgmr.msra.gmra.mrb[14].mxu0 %vm154_vm2, %v2761_v53  ;;  %vm1624_vm5 = vcmp.gt.f32.partialorder %v2761_v53, 0.0 }
 0x7c6   :  { %3320 = vmatpush3.bf16.msra.mxu0 %v3511_v12  ;;  %3112 = vmatprep.mubr.msk.f32.mxu0 %vm3413_vm1, %v3412_v2  ;;  %v1626_v55 = vsel %vm1624_vm5, 0.0, %v1625_v51 }
 0x7c7   :  { %vm1464_vm6 = vcmp.gt.f32.partialorder %v1463_v54, 0.5  ;;  %v1792_v56 = vmul.f32 0.75, %v1463_v54  ;;  %3321 = vmatprep.subr.bf16.mxu0 %v3414_v6 }
 0x7c8   :  { %v2766_v57 = vsel %vm1464_vm6, 1.0, %v3412_v2 }
 0x7c9   :  { %3102 = vmatmul.mubr.msk.f32.vlgmr.msra.gmra.mrb[18].mxu1 %vm154_vm2, %v2766_v57  ;;  %vm1791_vm7 = vcmp.gt.f32.partialorder %v2766_v57, 0.0 }
 0x7ca   :  { %3323 = vmatpush3.bf16.msra.mxu0 %v3531_v22  ;;  %3326 = vmatpush3.bf16.msra.mxu1 %v3541_v25  ;;  %v1793_v58 = vsel %vm1791_vm7, 0.0, %v1792_v56 }
 0x7cb   :  { %3126 = vmatprep.subr.mxu0 %v3412_v2  ;;  %3327 = vmatprep.subr.bf16.mxu1 %v3414_v6 }
 0x7cc   :  { %3123 = vmatprep.mubr.msk.f32.mxu1 %vm3413_vm1, %v3412_v2 }
 0x7ce   :  { %3329 = vmatpush3.bf16.msra.mxu1 %v3573_v36 }
 0x7cf   :  { %3336 = vmatprep.subr.bf16.mxu1 %v3414_v6 }
 0x898   :  { %v1369_v60 = vpop.f32.mrb[14].mxu0 }
 0x899   :  { %v1370_v61 = vadd.f32 %v3647_v29, %v1369_v60  ;;  %v3087_v63 = vpop.f32.mrb[15].mxu0 }
 0x89b   :  { %v3763_v1 = vadd.f32 %v1373_v62, %v1370_v61 }
 0x89c   :  { %v1536_v4 = vpop.f32.mrb[18].mxu1 }
 0x89d   :  { %v1378_v7 = vadd.f32 %v1377_v3, %v3763_v1  ;;  %v1537_v8 = vadd.f32 %v3548_v26, %v1536_v4  ;;  %v3103_v11 = vpop.f32.mrb[19].mxu1  ;;  %v1704_v49 = vmul.f32 0.5, %v3763_v1  ;;  %v2782_v1 = vld [vmem:[%s3938_s0 + $0x18] sm:$0xf] }
 0x89f   :  { %vm1379_vm9 = vcmp.gt.f32.partialorder %v1378_v7, 0.5  ;;  %v3768_v14 = vadd.f32 %v1540_v10, %v1537_v8  ;;  %v1707_v46 = vmul.f32 0.75, %v1378_v7 }
 0x8a0   :  { %v2763_v15 = vsel %vm1379_vm9, 1.0, %v3412_v2 }
 0x8a1   :  { %v1545_v16 = vadd.f32 %v1544_v40, %v3768_v14  ;;  %v3773_v17 = vadd.f32 %v2763_v15, %v3717_v34  ;;  %v1789_v34 = vmul.f32 0.5, %v3742_v52  ;;  %vm1706_vm3 = vcmp.gt.f32.partialorder %v2763_v15, 0.0 }
 0x8a2   :  { %v1708_v52 = vsel %vm1706_vm3, 0.0, %v1707_v46  ;;  %v1871_v56 = vmul.f32 0.5, %v3768_v14 }
 0x8a3   :  { %vm1546_vm10 = vcmp.gt.f32.partialorder %v1545_v16, 0.5  ;;  %v1874_v18 = vmul.f32 0.75, %v1545_v16 }
 0x8a4   :  { %v2768_v19 = vsel %vm1546_vm10, 1.0, %v3412_v2 }
 0x8a5   :  { %3113 = vmatmul.mubr.msk.f32.vlgmr.msra.gmra.mrb[16].mxu0 %vm154_vm2, %v2768_v19  ;;  %vm1873_vm11 = vcmp.gt.f32.partialorder %v2768_v19, 0.0 }
 0x8a6   :  { %3127 = vmatpush3.msra.mxu0 %v3469_v0  ;;  %3128 = vmatprep.mubr.msk.f32.mxu0 %vm3413_vm1, %v3412_v2  ;;  %v1875_v21 = vsel %vm1873_vm11, 0.0, %v1874_v18 }
 0x8a7   :  { %3330 = vmatprep.subr.bf16.mxu0 %v3414_v6 }
 0x8a9   :  { %3129 = vmatmul.mubr.msk.f32.vlgmr.msra.gmra.mrb[18].mxu0 %vm75_vm0, %v2773_v20 }
 0x8aa   :  { %3332 = vmatpush3.bf16.msra.mxu0 %v3484_v5  ;;  %3139 = vmatprep.mubr.msk.f32.mxu0 %vm3413_vm1, %v3412_v2 }
 0x8ab   :  { %3333 = vmatprep.subr.bf16.mxu0 %v3414_v6 }
 0x8ae   :  { %3335 = vmatpush3.bf16.msra.mxu0 %v3501_v9 }
 0x8af   :  { %3342 = vmatprep.subr.bf16.mxu0 %v3414_v6 }
 0x978   :  { %v1618_v23 = vpop.f32.mrb[16].mxu0 }
 0x979   :  { %v1619_v24 = vadd.f32 %v3580_v37, %v1618_v23  ;;  %v3114_v28 = vpop.f32.mrb[17].mxu0 }
 0x97b   :  { %v3793_v30 = vadd.f32 %v1622_v27, %v1619_v24 }
 0x97c   :  { %v1785_v31 = vpop.f32.mrb[18].mxu0 }
 0x97d   :  { %v1627_v32 = vadd.f32 %v1626_v55, %v3793_v30  ;;  %v1786_v33 = vadd.f32 %v3518_v13, %v1785_v31  ;;  %v3130_v35 = vpop.f32.mrb[19].mxu0  ;;  %v1953_v8 = vmul.f32 0.5, %v3793_v30 }
 0x97f   :  { %vm1628_vm12 = vcmp.gt.f32.partialorder %v1627_v32, 0.5  ;;  %v1956_v38 = vmul.f32 0.75, %v1627_v32  ;;  %v3798_v39 = vadd.f32 %v1789_v34, %v1786_v33 }
 0x980   :  { %v2770_v40 = vsel %vm1628_vm12, 1.0, %v3412_v2 }
 0x981   :  { %v1794_v41 = vadd.f32 %v1793_v58, %v3798_v39  ;;  %3124 = vmatmul.mubr.msk.f32.vlgmr.msra.gmra.mrb[20].mxu1 %vm154_vm2, %v2770_v40  ;;  %vm1955_vm13 = vcmp.gt.f32.partialorder %v2770_v40, 0.0 }
 0x982   :  { %3338 = vmatpush3.bf16.msra.mxu1 %v3511_v12  ;;  %3150 = vmatprep.mubr.msk.f32.mxu1 %vm3413_vm1, %v3412_v2  ;;  %v1957_v42 = vsel %vm1955_vm13, 0.0, %v1956_v38 }
 0x983   :  { %vm1795_vm14 = vcmp.gt.f32.partialorder %v1794_v41, 0.5  ;;  %v2123_v43 = vmul.f32 0.75, %v1794_v41  ;;  %3339 = vmatprep.subr.bf16.mxu1 %v3414_v6 }
 0x984   :  { %v2775_v44 = vsel %vm1795_vm14, 1.0, %v3412_v2 }
 0x985   :  { %3140 = vmatmul.mubr.msk.f32.vlgmr.msra.gmra.mrb[20].mxu0 %vm154_vm2, %v2775_v44  ;;  %vm2122_vm15 = vcmp.gt.f32.partialorder %v2775_v44, 0.0 }
 0x986   :  { %3341 = vmatpush3.bf16.msra.mxu1 %v3531_v22  ;;  %3344 = vmatpush3.bf16.msra.mxu0 %v3541_v25  ;;  %v2124_v45 = vsel %vm2122_vm15, 0.0, %v2123_v43 }
 0x987   :  { %3164 = vmatprep.subr.mxu1 %v3412_v2  ;;  %3345 = vmatprep.subr.bf16.mxu0 %v3414_v6 }
 0x988   :  { %3161 = vmatprep.mubr.msk.f32.mxu0 %vm3413_vm1, %v3412_v2 }
 0x98a   :  { %3347 = vmatpush3.bf16.msra.mxu0 %v3573_v36 }
 0x98b   :  { %3354 = vmatprep.subr.bf16.mxu0 %v3414_v6 }
 0xa54   :  { %v1700_v47 = vpop.f32.mrb[20].mxu1 }
 0xa55   :  { %v1701_v48 = vadd.f32 %v3647_v29, %v1700_v47  ;;  %v3125_v50 = vpop.f32.mrb[21].mxu1 }
 0xa57   :  { %v3819_v51 = vadd.f32 %v1704_v49, %v1701_v48 }
 0xa58   :  { %v1867_v53 = vpop.f32.mrb[20].mxu0 }
 0xa59   :  { %v1709_v54 = vadd.f32 %v1708_v52, %v3819_v51  ;;  %v1868_v55 = vadd.f32 %v3548_v26, %v1867_v53  ;;  %v3141_v57 = vpop.f32.mrb[21].mxu0  ;;  %v2035_v34 = vmul.f32 0.5, %v3819_v51  ;;  %v2791_v51 = vld [vmem:[%s3938_s0 + $0x1c] sm:$0xf]  ;;  %s3415_s0 = smov [#allocation2]  }
 0xa5a   :  { %s2717_s27 = sshll.u32 %s3415_s0, 4  ;;  %s2718_s27 = int_to_ptr.vmem [resolvable:$true] %s2717_s27 }
 0xa5b   :  { %vm1710_vm4 = vcmp.gt.f32.partialorder %v1709_v54, 0.5  ;;  %v3824_v58 = vadd.f32 %v1871_v56, %v1868_v55  ;;  %v2038_v31 = vmul.f32 0.75, %v1709_v54  ;;  %s3388_s28 = scalar_lea.vmem %s2718_s27, 64  ;;  %p3393_p1 = scmp.lt.s32.totalorder %s2718_s27, %s2718_s27 }
 0xa5c   :  { %v2772_v59 = vsel %vm1710_vm4, 1.0, %v3412_v2  ;;  %p3389_p0 = scmp.ne.s32.totalorder %s2718_s27, %s3388_s28  ;;  %p3394_p2 = scmp.lt.s32.totalorder %s3388_s28, %s3388_s28 }
 0xa5d   :  { %v1876_v60 = vadd.f32 %v1875_v21, %v3824_v58  ;;  %v3829_v61 = vadd.f32 %v2772_v59, %v3773_v17  ;;  %v2120_v17 = vmul.f32 0.5, %v3798_v39  ;;  %vm2037_vm11 = vcmp.gt.f32.partialorder %v2772_v59, 0.0 }
 0xa5e   :  { %v2039_v39 = vsel %vm2037_vm11, 0.0, %v2038_v31  ;;  %v2202_v43 = vmul.f32 0.5, %v3824_v58  ;;  %p3395_p3 = por %p3394_p2, %p3393_p1 }
 0xa5f   :  { %vm1877_vm5 = vcmp.gt.f32.partialorder %v1876_v60, 0.5  ;;  %v2205_v62 = vmul.f32 0.75, %v1876_v60 }
 0xa60   :  { %v2777_v63 = vsel %vm1877_vm5, 1.0, %v3412_v2  ;;  %p3396_p4 = pnand %p3395_p3, %p3389_p0 }
 0xa61   :  { %3151 = vmatmul.mubr.msk.f32.vlgmr.msra.gmra.mrb[22].mxu1 %vm154_vm2, %v2777_v63  ;;  %vm2204_vm6 = vcmp.gt.f32.partialorder %v2777_v63, 0.0 }
 0xa62   :  { %3165 = vmatpush3.msra.mxu1 %v3469_v0  ;;  %3166 = vmatprep.mubr.msk.f32.mxu1 %vm3413_vm1, %v3412_v2  ;;  %v2206_v3 = vsel %vm2204_vm6, 0.0, %v2205_v62 }
 0xa63   :  { %3348 = vmatprep.subr.bf16.mxu1 %v3414_v6 }
 0xa65   :  { %3167 = vmatmul.mubr.msk.f32.vlgmr.msra.gmra.mrb[24].mxu1 %vm75_vm0, %v2782_v1 }
 0xa66   :  { %3350 = vmatpush3.bf16.msra.mxu1 %v3484_v5  ;;  %3177 = vmatprep.mubr.msk.f32.mxu1 %vm3413_vm1, %v3412_v2 }
 0xa67   :  { %3351 = vmatprep.subr.bf16.mxu1 %v3414_v6 }
 0xa6a   :  { %3353 = vmatpush3.bf16.msra.mxu1 %v3501_v9 }
 0xa6b   :  { %3360 = vmatprep.subr.bf16.mxu1 %v3414_v6 }
 0xb34   :  { %v1949_v4 = vpop.f32.mrb[22].mxu1 }
 0xb35   :  { %v1950_v7 = vadd.f32 %v3580_v37, %v1949_v4  ;;  %v3152_v10 = vpop.f32.mrb[23].mxu1 }
 0xb37   :  { %v3849_v11 = vadd.f32 %v1953_v8, %v1950_v7 }
 0xb38   :  { %v2116_v14 = vpop.f32.mrb[24].mxu1 }
 0xb39   :  { %v1958_v15 = vadd.f32 %v1957_v42, %v3849_v11  ;;  %v2117_v16 = vadd.f32 %v3518_v13, %v2116_v14  ;;  %v3168_v18 = vpop.f32.mrb[25].mxu1  ;;  %v2284_v54 = vmul.f32 0.5, %v3849_v11 }
 0xb3b   :  { %vm1959_vm7 = vcmp.gt.f32.partialorder %v1958_v15, 0.5  ;;  %v2287_v19 = vmul.f32 0.75, %v1958_v15  ;;  %v3854_v20 = vadd.f32 %v2120_v17, %v2117_v16 }
 0xb3c   :  { %v2779_v21 = vsel %vm1959_vm7, 1.0, %v3412_v2 }
 0xb3d   :  { %v2125_v23 = vadd.f32 %v2124_v45, %v3854_v20  ;;  %3162 = vmatmul.mubr.msk.f32.vlgmr.msra.gmra.mrb[22].mxu0 %vm154_vm2, %v2779_v21  ;;  %vm2286_vm8 = vcmp.gt.f32.partialorder %v2779_v21, 0.0  ;;  %v2451_v59 = vmul.f32 0.5, %v3854_v20 }
 0xb3e   :  { %3356 = vmatpush3.bf16.msra.mxu0 %v3511_v12  ;;  %3188 = vmatprep.mubr.msk.f32.mxu0 %vm3413_vm1, %v3412_v2  ;;  %v2288_v24 = vsel %vm2286_vm8, 0.0, %v2287_v19 }
 0xb3f   :  { %vm2126_vm9 = vcmp.gt.f32.partialorder %v2125_v23, 0.5  ;;  %v2454_v27 = vmul.f32 0.75, %v2125_v23  ;;  %3357 = vmatprep.subr.bf16.mxu0 %v3414_v6 }
 0xb40   :  { %v2784_v28 = vsel %vm2126_vm9, 1.0, %v3412_v2  ;;  %vm2709_vm9 = vcmask 27648  }
 0xb41   :  { %3178 = vmatmul.mubr.msk.f32.vlgmr.msra.gmra.mrb[26].mxu1 %vm154_vm2, %v2784_v28  ;;  %vm2453_vm10 = vcmp.gt.f32.partialorder %v2784_v28, 0.0 }
 0xb42   :  { %3359 = vmatpush3.bf16.msra.mxu0 %v3531_v22  ;;  %3362 = vmatpush3.bf16.msra.mxu1 %v3541_v25  ;;  %v2455_v30 = vsel %vm2453_vm10, 0.0, %v2454_v27 }
 0xb43   :  { %3202 = vmatprep.subr.mxu0 %v3412_v2  ;;  %3363 = vmatprep.subr.bf16.mxu1 %v3414_v6 }
 0xb44   :  { %3199 = vmatprep.mubr.msk.f32.mxu1 %vm3413_vm1, %v3412_v2 }
 0xb46   :  { %3365 = vmatpush3.bf16.msra.mxu1 %v3573_v36 }
 0xb47   :  { %3372 = vmatprep.subr.bf16.mxu1 %v3414_v6 }
 0xc10   :  { %v2031_v32 = vpop.f32.mrb[22].mxu0 }
 0xc11   :  { %v2032_v33 = vadd.f32 %v3647_v29, %v2031_v32  ;;  %v3163_v35 = vpop.f32.mrb[23].mxu0 }
 0xc13   :  { %v2036_v38 = vadd.f32 %v2035_v34, %v2032_v33 }
 0xc14   :  { %v2198_v40 = vpop.f32.mrb[26].mxu1 }
 0xc15   :  { %v2040_v41 = vadd.f32 %v2039_v39, %v2036_v38  ;;  %v2199_v42 = vadd.f32 %v3548_v26, %v2198_v40  ;;  %v3179_v44 = vpop.f32.mrb[27].mxu1  ;;  %v2366_v7 = vmul.f32 0.5, %v2036_v38 }
 0xc17   :  { %vm2041_vm12 = vcmp.gt.f32.partialorder %v2040_v41, 0.5  ;;  %v2203_v45 = vadd.f32 %v2202_v43, %v2199_v42 }
 0xc18   :  { %v2781_v46 = vsel %vm2041_vm12, 1.0, %v3412_v2 }
 0xc19   :  { %v2207_v47 = vadd.f32 %v2206_v3, %v2203_v45  ;;  %v3879_v48 = vadd.f32 %v2781_v46, %v3829_v61  ;;  %vm2368_vm4 = vcmp.gt.f32.partialorder %v2781_v46, 0.0  ;;  %v2533_v15 = vmul.f32 0.5, %v2203_v45 }
 0xc1b   :  { %vm2208_vm13 = vcmp.gt.f32.partialorder %v2207_v47, 0.5  ;;  %v2536_v49 = vmul.f32 0.75, %v2207_v47 }
 0xc1c   :  { %v2786_v50 = vsel %vm2208_vm13, 1.0, %v3412_v2 }
 0xc1d   :  { %3189 = vmatmul.mubr.msk.f32.vlgmr.msra.gmra.mrb[24].mxu0 %vm154_vm2, %v2786_v50  ;;  %vm2535_vm14 = vcmp.gt.f32.partialorder %v2786_v50, 0.0 }
 0xc1e   :  { %3203 = vmatpush3.msra.mxu0 %v3469_v0  ;;  %3204 = vmatprep.mubr.msk.f32.mxu0 %vm3413_vm1, %v3412_v2  ;;  %v2537_v52 = vsel %vm2535_vm14, 0.0, %v2536_v49 }
 0xc1f   :  { %3366 = vmatprep.subr.bf16.mxu0 %v3414_v6 }
 0xc21   :  { %3205 = vmatmul.mubr.msk.f32.vlgmr.msra.gmra.mrb[26].mxu0 %vm75_vm0, %v2791_v51 }
 0xc22   :  { %3368 = vmatpush3.bf16.msra.mxu0 %v3484_v5  ;;  %3215 = vmatprep.mubr.msk.f32.mxu0 %vm3413_vm1, %v3412_v2 }
 0xc23   :  { %3369 = vmatprep.subr.bf16.mxu0 %v3414_v6 }
 0xc26   :  { %3371 = vmatpush3.bf16.msra.mxu0 %v3501_v9 }
 0xc27   :  { %3378 = vmatprep.subr.bf16.mxu0 %v3414_v6 }
 0xcf0   :  { %v2280_v0 = vpop.f32.mrb[24].mxu0 }
 0xcf1   :  { %v2281_v53 = vadd.f32 %v3580_v37, %v2280_v0  ;;  %v3190_v55 = vpop.f32.mrb[25].mxu0 }
 0xcf3   :  { %v2285_v56 = vadd.f32 %v2284_v54, %v2281_v53 }
 0xcf4   :  { %v2447_v57 = vpop.f32.mrb[26].mxu0 }
 0xcf5   :  { %v2289_v58 = vadd.f32 %v2288_v24, %v2285_v56  ;;  %v2448_v5 = vadd.f32 %v3518_v13, %v2447_v57  ;;  %v3206_v60 = vpop.f32.mrb[27].mxu0  ;;  %v2615_v23 = vmul.f32 0.5, %v2285_v56 }
 0xcf7   :  { %vm2290_vm0 = vcmp.gt.f32.partialorder %v2289_v58, 0.5  ;;  %v2618_v61 = vmul.f32 0.75, %v2289_v58  ;;  %v2452_v62 = vadd.f32 %v2451_v59, %v2448_v5 }
 0xcf8   :  { %v2788_v9 = vsel %vm2290_vm0, 1.0, %v3412_v2 }
 0xcf9   :  { %v2456_v63 = vadd.f32 %v2455_v30, %v2452_v62  ;;  %3200 = vmatmul.mubr.msk.f32.vlgmr.msra.gmra.mrb[28].mxu1 %vm154_vm2, %v2788_v9  ;;  %vm2617_vm15 = vcmp.gt.f32.partialorder %v2788_v9, 0.0 }
 0xcfa   :  { %3374 = vmatpush3.bf16.msra.mxu1 %v3511_v12  ;;  %3226 = vmatprep.mubr.msk.f32.mxu1 %vm3413_vm1, %v3412_v2  ;;  %v2619_v1 = vsel %vm2617_vm15, 0.0, %v2618_v61  ;;  %v2369_v12 = vmul.f32 0.75, %v2040_v41 }
 0xcfb   :  { %vm2457_vm3 = vcmp.gt.f32.partialorder %v2456_v63, 0.5  ;;  %3375 = vmatprep.subr.bf16.mxu1 %v3414_v6 }
 0xcfc   :  { %v2793_v13 = vsel %vm2457_vm3, 1.0, %v3412_v2  ;;  %v2370_v11 = vsel %vm2368_vm4, 0.0, %v2369_v12 }
 0xcfd   :  { %3216 = vmatmul.mubr.msk.f32.vlgmr.msra.gmra.mrb[28].mxu0 %vm154_vm2, %v2793_v13 }
 0xcfe   :  { %3377 = vmatpush3.bf16.msra.mxu1 %v3531_v22  ;;  %3380 = vmatpush3.bf16.msra.mxu0 %v3541_v25 }
 0xcff   :  { %3381 = vmatprep.subr.bf16.mxu0 %v3414_v6  ;;  %3237 = vmatprep.mubr.msk.f32.mxu0 %vm3413_vm1, %v3412_v2 }
 0xd02   :  { %3383 = vmatpush3.bf16.msra.mxu0 %v3573_v36 }
 0xdcc   :  { %v2362_v3 = vpop.f32.mrb[28].mxu1 }
 0xdcd   :  { %v2363_v4 = vadd.f32 %v3647_v29, %v2362_v3  ;;  %v3201_v8 = vpop.f32.mrb[29].mxu1 }
 0xdcf   :  { %v2367_v10 = vadd.f32 %v2366_v7, %v2363_v4 }
 0xdd0   :  { %v2529_v14 = vpop.f32.mrb[28].mxu0 }
 0xdd1   :  { %v2371_v22 = vadd.f32 %v2370_v11, %v2367_v10  ;;  %v2530_v25 = vadd.f32 %v3548_v26, %v2529_v14  ;;  %v3217_v6 = vpop.f32.mrb[29].mxu0  ;;  %v2697_v33 = vmul.f32 0.5, %v2367_v10 }
 0xdd3   :  { %vm2372_vm5 = vcmp.gt.f32.partialorder %v2371_v22, 0.5  ;;  %v2534_v16 = vadd.f32 %v2533_v15, %v2530_v25  ;;  %v2700_v30 = vmul.f32 0.75, %v2371_v22 }
 0xdd4   :  { %v2790_v17 = vsel %vm2372_vm5, 1.0, %v3412_v2 }
 0xdd5   :  { %v2538_v36 = vadd.f32 %v2537_v52, %v2534_v16  ;;  %v2375_v18 = vadd.f32 %v2790_v17, %v3879_v48  ;;  %vm2699_vm7 = vcmp.gt.f32.partialorder %v2790_v17, 0.0 }
 0xdd6   :  { %v2701_v38 = vsel %vm2699_vm7, 0.0, %v2700_v30 }
 0xdd7   :  { %vm2539_vm1 = vcmp.gt.f32.partialorder %v2538_v36, 0.5 }
 0xdd8   :  { %v2795_v19 = vsel %vm2539_vm1, 1.0, %v3412_v2 }
 0xdd9   :  { %3227 = vmatmul.mubr.msk.f32.vlgmr.msra.gmra.mrb[30].mxu1 %vm154_vm2, %v2795_v19 }
 0xeac   :  { %v2611_v20 = vpop.f32.mrb[30].mxu1 }
 0xead   :  { %v2612_v21 = vadd.f32 %v3580_v37, %v2611_v20  ;;  %v3228_v24 = vpop.f32.mrb[31].mxu1 }
 0xeaf   :  { %v2616_v26 = vadd.f32 %v2615_v23, %v2612_v21 }
 0xeb1   :  { %v2620_v27 = vadd.f32 %v2619_v1, %v2616_v26 }
 0xeb3   :  { %vm2621_vm6 = vcmp.gt.f32.partialorder %v2620_v27, 0.5 }
 0xeb4   :  { %v2797_v28 = vsel %vm2621_vm6, 1.0, %v3412_v2 }
 0xeb5   :  { %3238 = vmatmul.mubr.msk.f32.vlgmr.msra.gmra.mrb[30].mxu0 %vm154_vm2, %v2797_v28 }
 0xf88   :  { %v2693_v31 = vpop.f32.mrb[30].mxu0 }
 0xf89   :  { %v2694_v32 = vadd.f32 %v3647_v29, %v2693_v31  ;;  %v3239_v34 = vpop.f32.mrb[31].mxu0 }
 0xf8b   :  { %v2698_v35 = vadd.f32 %v2697_v33, %v2694_v32 }
 0xf8d   :  { %v2702_v39 = vadd.f32 %v2701_v38, %v2698_v35 }
 0xf8f   :  { %vm2703_vm8 = vcmp.gt.f32.partialorder %v2702_v39, 0.5 }
 0xf90   :  { %v2799_v37 = vsel %vm2703_vm8, 1.0, %v3412_v2 }
 0xf91   :  { %v2706_v40 = vadd.f32 %v2799_v37, %v2375_v18 }
 0xf93   :  { %v2708_v41 = vmul.f32 0.125, %v2706_v40 }
 0xf95   :  { %2710 = vst.msk [vmem:[#allocation2] sm:$0xf] %vm2709_vm9, %v2708_v41 }
 0xf96   :  { %3399 = shalt.err (!%p3396_p4)
}
 0xf97   :  { %s3400_s10 = scalar_lea.hbm %s3947_s9, 64 }
 0xf98   :  { %p3401_p5 = scmp.ne.s32.totalorder %s3947_s9, %s3400_s10  ;;  %p3404_p6 = scmp.lt.u32.totalorder %s3400_s10, %s3947_s9 }
 0xf9a   :  { %p3406_p7 = pnand %p3404_p6, %p3401_p5 }
 0xf9c   :  { %3409 = shalt.err (!%p3406_p7)
}
 0xf9d   :  { %2720 = dma.vmem_to_hbm [thread:$0]  %s2718_s27, 64, %s3947_s9, [#allocation3]  }
 0xf9e   :  { %3410 = dma.done.wait [#allocation3], 64  }
 0xf9f   :  { %3411 = vsyncadd [#allocation3], 4294967232 }
 0xfa0   :  { %2724 = vsyncpa [#allocation3], 1 }

</bundles_post_ra>
